<compile_context>
chip_gen: v7x
topology: tpu7x:2x2x1
jax: 0.10.0
libtpu: 0.0.40
codegen_flags: <defaults>
</compile_context>

<pallas_src>
import functools

import jax
import jax.numpy as jnp
from jax import lax
from jax.experimental import pallas as pl
from jax.experimental.pallas import tpu as pltpu


_TAPS = tuple((ky - 1, kx - 1) for ky in range(3) for kx in range(3))
_GELU_C = 0.7978845608028654  # sqrt(2/pi)


def _round_up(n, m):
    return (n + m - 1) // m * m


# -------------------------- in-kernel helpers --------------------------------

def _gelu_tanh(z):
    # tanh-approx GELU: tanh runs on the (otherwise idle) EUP slot.
    return 0.5 * z * (1.0 + jnp.tanh(_GELU_C * (z + 0.044715 * (z * z * z))))


# ------------------------------ the kernel ------------------------------------

def _double_conv_kernel(x_ref, m_ref, w1_ref, w2_ref, g1_ref, b1_ref, g2_ref, b2_ref,
                        o_ref, *, H, W, bt, c_out, residual, mxu_dtype):
    HW = H * W
    N = bt * HW                                    # fused lane axis (all bt samples)
    cout_p = w1_ref.shape[0]
    pad_rows = cout_p - c_out
    eps = 1e-5
    inv_n = 1.0 / float(c_out * HW)                # GroupNorm uses the REAL element count

    # Resident operands (constant index_map -> DMA'd once, reused every grid step).
    masks = m_ref[...]                             # (8, N) in mxu_dtype (0/1, exact)
    mask_rows = [masks[i:i + 1, :] for i in range(8)]
    w1 = w1_ref[...]                               # (cout_p, 9*cin_p)  pre-cast mxu_dtype
    w2 = w2_ref[...]                               # (cout_p, 9*cout_p) pre-cast mxu_dtype
    g1 = g1_ref[...]                               # (cout_p, 1) f32
    b1 = b1_ref[...]
    g2 = g2_ref[...]
    b2 = b2_ref[...]

    def conv3x3(xb, w):
        """3x3 'same' conv of the fused (C, bt*HW) tile -> ONE MXU matmul.

        The 9 taps are masked lane-rolls; positions where a roll crosses an image /
        sample boundary are exactly the masked (zeroed) ones, so samples never mix.
        Everything stays in mxu_dtype until the f32-accumulating dot.
        """
        taps = []
        mi = 0
        for dy, dx in _TAPS:
            if dy == 0 and dx == 0:
                taps.append(xb)                    # center tap: no roll, no mask
            else:
                shift = (-(dy * W + dx)) % N       # rolled[:, n] == xb[:, n + dy*W + dx]
                taps.append(pltpu.roll(xb, shift=shift, axis=1) * mask_rows[mi])
                mi += 1
        t = jnp.concatenate(taps, axis=0)          # (9*C, N), sublane-aligned
        return jnp.dot(w, t, preferred_element_type=jnp.float32)   # (cout_p, N) f32

    def gn_stats(v):
        """Two-pass GroupNorm(1) statistics of one sample slice (cout_p, HW).

        Padded channel rows of v are exactly 0; they contribute pad_rows*HW*mu^2 to
        sum(d*d), which is subtracted so the variance matches GroupNorm(1, c_out).
        """
        mu = jnp.sum(v) * inv_n
        d = v - mu
        ss = jnp.sum(d * d)
        if pad_rows:
            ss = ss - (pad_rows * HW) * mu * mu
        var = jnp.maximum(ss * inv_n, 0.0)
        return d, lax.rsqrt(var + eps)

    # ---- conv1 over the fused bt*HW lane axis (one MXU matmul) ----
    xb = jnp.concatenate([x_ref[i].astype(mxu_dtype) for i in range(bt)], axis=1)
    h1 = conv3x3(xb, w1)                           # (cout_p, N) f32

    # ---- GroupNorm(1) + GELU per sample (folded affine), repacked for conv2 ----
    # (light per-sample loop only; the heavy matmuls are already batch-fused)
    pieces = []
    for i in range(bt):
        d, rstd = gn_stats(h1[:, i * HW:(i + 1) * HW])
        z = _gelu_tanh(d * (g1 * rstd) + b1)       # padded rows stay exactly 0
        pieces.append(z.astype(mxu_dtype))
    h1b = jnp.concatenate(pieces, axis=1)          # (cout_p, N) mxu_dtype

    # ---- conv2 (one MXU matmul) + GroupNorm(1) (+ residual GELU), per-sample store ----
    h2 = conv3x3(h1b, w2)                          # (cout_p, N) f32
    for i in range(bt):
        d, rstd = gn_stats(h2[:, i * HW:(i + 1) * HW])
        z = d * (g2 * rstd) + b2
        if residual:
            z = _gelu_tanh(x_ref[i].astype(jnp.float32) + z)   # F.gelu(x + dc(x))
        o_ref[i] = z.astype(o_ref.dtype)


# ------------------------------ wrapper ---------------------------------------

def _im2col_weight(w, cin_p, cout_p):
    """PyTorch OIHW (Cout, Cin, 3, 3) -> (Cout_p, 9*Cin_p), columns ordered (ky,kx,cin)."""
    cout, cin = w.shape[0], w.shape[1]
    w = jnp.pad(w, ((0, cout_p - cout), (0, cin_p - cin), (0, 0), (0, 0)))
    return jnp.transpose(w, (0, 2, 3, 1)).reshape(cout_p, 9 * cin_p)


def _pad_affine(v, cout_p):
    """(Cout,) GroupNorm affine param -> (Cout_p, 1), zero padded (keeps padded rows 0)."""
    v = v.reshape(-1)
    return jnp.pad(v, (0, cout_p - v.shape[0])).reshape(cout_p, 1)


def _build_masks(H, W, bt, dtype):
    """8 boundary masks for the non-center taps over the fused bt*HW lane axis."""
    HW = H * W
    pos = jnp.arange(bt * HW, dtype=jnp.int32) % HW
    hh = pos // W
    ww = pos % W
    rows = []
    for dy, dx in _TAPS:
        if dy == 0 and dx == 0:
            continue
        ok = (hh + dy >= 0) & (hh + dy < H) & (ww + dx >= 0) & (ww + dx < W)
        rows.append(ok)
    return jnp.stack(rows, axis=0).astype(dtype)   # (8, bt*HW)


def _vmem_estimate(bt, cin_p, cout_p, HW, x_bytes, out_bytes, mxu_bytes):
    """Rough per-grid-step VMEM footprint (double-buffered blocks + live temps)."""
    N = bt * HW
    cmax = max(cin_p, cout_p)
    est = 0
    est += 2 * bt * cin_p * HW * x_bytes                        # input block (x2 buf)
    est += 2 * bt * cout_p * HW * out_bytes                     # output block (x2 buf)
    est += 2 * 8 * N * mxu_bytes                                # boundary masks
    est += 2 * 9 * cout_p * (cin_p + cout_p) * mxu_bytes        # im2col weights
    est += 8 * cout_p * 4                                       # gamma/beta
    est += 9 * cmax * N * mxu_bytes                              # im2col tile
    est += cin_p * N * mxu_bytes                                 # conv1 input (mxu dtype)
    est += cout_p * N * (4 + mxu_bytes + 4)                      # h1 f32, h1b, h2 f32
    est += 2 * cout_p * HW * 4                                   # per-sample GN temps
    return est


def double_conv(x_nchw, w1, w2, g1, b1, g2, b2, *, residual=False,
                block_batch=None, mxu_dtype=jnp.bfloat16):
    """Fused DoubleConv forward.

    x_nchw: (B, Cin, H, W).  w1: (Cout, Cin, 3, 3), w2: (Cout, Cout, 3, 3) (PyTorch
    OIHW, bias-free).  g*/b*: (Cout,) GroupNorm(1, Cout) affine.  Returns (B, Cout, H, W).
    """
    B, Cin, H, W = x_nchw.shape
    Cout = w1.shape[0]
    HW = H * W
    if residual:
        assert Cin == Cout, "residual DoubleConv requires in_c == out_c"

    mxu_bytes = jnp.dtype(mxu_dtype).itemsize
    x_bytes = jnp.dtype(x_nchw.dtype).itemsize
    pad_mult = 16 if mxu_bytes == 2 else 8          # bf16 packs 16 sublanes per vreg tile
    cin_p, cout_p = _round_up(Cin, pad_mult), _round_up(Cout, pad_mult)

    # ---- hardware-aware VMEM budget and block-batch selection ----
    try:
        vmem_cap = int(pltpu.get_tpu_info().vmem_capacity_bytes)
    except Exception:
        vmem_cap = 128 * 2**20                      # v5e/v6e default
    multi_tc = vmem_cap <= 80 * 2**20               # v7x-class: 64 MiB/TC, 2 TCs/chip
    budget = min(int(0.72 * vmem_cap), 100 * 2**20)

    def est(bt):
        return _vmem_estimate(bt, cin_p, cout_p, HW, x_bytes, x_bytes, mxu_bytes)

    if block_batch is None:
        divisors = [d for d in range(1, min(B, 8) + 1) if B % d == 0]
        fitting = [d for d in divisors if est(d) <= budget] or [1]
        if multi_tc:
            # keep >=2 grid steps so both TensorCores get work (batch axis is parallel)
            two = [d for d in fitting if B // d >= 2]
            bt = max(two) if two else min(fitting)
        else:
            bt = max(fitting)                       # single TC: biggest block that fits
    else:
        bt = block_batch
    assert B % bt == 0
    vmem_limit = int(min(max(2 * est(bt), 32 * 2**20), budget))
    # TODO(synk): for UNet feature maps whose (9*C, bt*HW) im2col tile overflows v7x's
    # 64 MiB VMEM even at bt=1, add H-tiling with a 1-row halo and a two-pass GroupNorm
    # (sum/sumsq scratch accumulated across H-tiles, normalize in a finalize step).
    # TODO(synk): optional bf16 activation I/O (cast x / output at the pallas_call
    # boundary) would halve HBM traffic for the mem-bound small-C layers.

    # NCHW -> (B, C, H*W) is a pure reshape (no transpose); pad channels (zeros).
    xf = jnp.pad(x_nchw.reshape(B, Cin, HW), ((0, 0), (0, cin_p - Cin), (0, 0)))
    # Weights pre-cast to the MXU dtype in the wrapper (no in-kernel cast).
    w1m = _im2col_weight(w1, cin_p, cout_p).astype(mxu_dtype)   # (Cout_p, 9*Cin_p)
    w2m = _im2col_weight(w2, cout_p, cout_p).astype(mxu_dtype)  # (Cout_p, 9*Cout_p)
    g1c, b1c = _pad_affine(g1, cout_p), _pad_affine(b1, cout_p)
    g2c, b2c = _pad_affine(g2, cout_p), _pad_affine(b2, cout_p)
    masks = _build_masks(H, W, bt, mxu_dtype)                   # (8, bt*HW), resident

    kernel = functools.partial(_double_conv_kernel, H=H, W=W, bt=bt, c_out=Cout,
                               residual=residual, mxu_dtype=mxu_dtype)

    out = pl.pallas_call(
        kernel,
        out_shape=jax.ShapeDtypeStruct((B, cout_p, HW), x_nchw.dtype),
        grid=(B // bt,),
        in_specs=[
            pl.BlockSpec((bt, cin_p, HW), lambda b: (b, 0, 0)),
            pl.BlockSpec((8, bt * HW), lambda b: (0, 0)),
            pl.BlockSpec((cout_p, 9 * cin_p), lambda b: (0, 0)),
            pl.BlockSpec((cout_p, 9 * cout_p), lambda b: (0, 0)),
            pl.BlockSpec((cout_p, 1), lambda b: (0, 0)),
            pl.BlockSpec((cout_p, 1), lambda b: (0, 0)),
            pl.BlockSpec((cout_p, 1), lambda b: (0, 0)),
            pl.BlockSpec((cout_p, 1), lambda b: (0, 0)),
        ],
        out_specs=pl.BlockSpec((bt, cout_p, HW), lambda b: (b, 0, 0)),
        compiler_params=pltpu.CompilerParams(
            dimension_semantics=("parallel",),
            vmem_limit_bytes=vmem_limit),
    )(xf, masks, w1m, w2m, g1c, b1c, g2c, b2c)

    out = out.reshape(B, cout_p, H, W)
    # Skip the extra HBM pass of the channel crop whenever Cout is already aligned.
    return out if cout_p == Cout else out[:, :Cout]


# ------------------------- pure-JAX reference ---------------------------------

def _ref_double_conv(x, w1, w2, g1, b1, g2, b2, *, residual=False):
    def conv(v, w):  # PyTorch OIHW weights, 'same' padding, no bias
        return lax.conv_general_dilated(
            v, w, window_strides=(1, 1), padding="SAME",
            dimension_numbers=("NCHW", "OIHW", "NCHW"),
            precision=lax.Precision.HIGHEST)

    def gn(v, g, b):  # GroupNorm(1, C)
        mu = v.mean(axis=(1, 2, 3), keepdims=True)
        var = ((v - mu) ** 2).mean(axis=(1, 2, 3), keepdims=True)
        return ((v - mu) * lax.rsqrt(var + 1e-5)
                * g.reshape(1, -1, 1, 1) + b.reshape(1, -1, 1, 1))

    def gelu(z):  # exact (erf) GELU == PyTorch nn.GELU() default
        return 0.5 * z * (1.0 + lax.erf(z / jnp.sqrt(2.0)))

    h = gelu(gn(conv(x, w1), g1, b1))
    h = gn(conv(h, w2), g2, b2)
    return gelu(x + h) if residual else h


# ------------------------------ demo / test ------------------------------------

if __name__ == "__main__":
    key = jax.random.PRNGKey(0)
    ks = jax.random.split(key, 10)

    # --- non-residual DoubleConv: in_c=4 -> out_c=8, 16x16 images, batch 2 ---
    B, Cin, Cout, H, W = 2, 4, 8, 16, 16
    x = jax.random.normal(ks[0], (B, Cin, H, W), jnp.float32)
    w1 = jax.random.normal(ks[1], (Cout, Cin, 3, 3), jnp.float32) / jnp.sqrt(9.0 * Cin)
    w2 = jax.random.normal(ks[2], (Cout, Cout, 3, 3), jnp.float32) / jnp.sqrt(9.0 * Cout)
    g1 = 1.0 + 0.1 * jax.random.normal(ks[3], (Cout,), jnp.float32)
    b1 = 0.1 * jax.random.normal(ks[4], (Cout,), jnp.float32)
    g2 = 1.0 + 0.1 * jax.random.normal(ks[5], (Cout,), jnp.float32)
    b2 = 0.1 * jax.random.normal(ks[6], (Cout,), jnp.float32)

    ref = _ref_double_conv(x, w1, w2, g1, b1, g2, b2, residual=False)

    # f32-MXU path: tight structural check (only the tanh-GELU approximation differs).
    out32 = double_conv(x, w1, w2, g1, b1, g2, b2, residual=False,
                        mxu_dtype=jnp.float32)
    jax.block_until_ready(out32)
    assert out32.shape == (B, Cout, H, W)
    err32 = float(jnp.max(jnp.abs(out32 - ref)))
    assert jnp.allclose(out32, ref, atol=1e-2, rtol=1e-2), \
        f"mismatch (non-residual, f32 MXU): max abs err {err32}"

    # bf16-MXU path (default; the fast path on v6e/v7x).  Tolerance covers bf16 operand
    # rounding through two convs (f32 accumulation, f32 GN/GELU).
    outbf = double_conv(x, w1, w2, g1, b1, g2, b2, residual=False)
    jax.block_until_ready(outbf)
    errbf = float(jnp.max(jnp.abs(outbf - ref)))
    assert jnp.allclose(outbf, ref, atol=2.5e-2, rtol=2.5e-2), \
        f"mismatch (non-residual, bf16 MXU): max abs err {errbf}"

    # --- residual DoubleConv: in_c == out_c == 8, batch 4 ---
    Br = 4
    xr = jax.random.normal(ks[7], (Br, Cout, H, W), jnp.float32)
    w1r = jax.random.normal(ks[8], (Cout, Cout, 3, 3), jnp.float32) / jnp.sqrt(9.0 * Cout)
    ref_r = _ref_double_conv(xr, w1r, w2, g1, b1, g2, b2, residual=True)
    out_r = double_conv(xr, w1r, w2, g1, b1, g2, b2, residual=True)
    jax.block_until_ready(out_r)
    err_r = float(jnp.max(jnp.abs(out_r - ref_r)))
    assert out_r.shape == (Br, Cout, H, W)
    assert jnp.allclose(out_r, ref_r, atol=2.5e-2, rtol=2.5e-2), \
        f"mismatch (residual, bf16 MXU): max abs err {err_r}"

    print("KERNEL_OK")
</pallas_src>

<mosaic_0001>
module attributes {stable_mosaic.version = 11 : i64} {
  func.func @_double_conv_kernel(%arg0: i32, %arg1: memref<2x8x256xf32, #tpu.memory_space<vmem>>, %arg2: memref<8x512xf32, #tpu.memory_space<vmem>>, %arg3: memref<8x72xf32, #tpu.memory_space<vmem>>, %arg4: memref<8x72xf32, #tpu.memory_space<vmem>>, %arg5: memref<8x1xf32, #tpu.memory_space<vmem>>, %arg6: memref<8x1xf32, #tpu.memory_space<vmem>>, %arg7: memref<8x1xf32, #tpu.memory_space<vmem>>, %arg8: memref<8x1xf32, #tpu.memory_space<vmem>>, %arg9: memref<2x8x256xf32, #tpu.memory_space<vmem>>) attributes {dimension_semantics = [#tpu.dimension_semantics<parallel>], iteration_bounds = array<i64: 1>, scalar_prefetch = 0 : i64, scratch_operands = 0 : i64, tpu.core_type = #tpu.core_type<tc>, window_params = [{transform_indices = @transform_0, window_bounds = array<i64: 2, 8, 256>}, {pipeline_mode = #tpu.pipeline_mode<synchronous>, transform_indices = @transform_1, window_bounds = array<i64: 8, 512>}, {pipeline_mode = #tpu.pipeline_mode<synchronous>, transform_indices = @transform_2, window_bounds = array<i64: 8, 72>}, {pipeline_mode = #tpu.pipeline_mode<synchronous>, transform_indices = @transform_3, window_bounds = array<i64: 8, 72>}, {pipeline_mode = #tpu.pipeline_mode<synchronous>, transform_indices = @transform_4, window_bounds = array<i64: 8, 1>}, {pipeline_mode = #tpu.pipeline_mode<synchronous>, transform_indices = @transform_5, window_bounds = array<i64: 8, 1>}, {pipeline_mode = #tpu.pipeline_mode<synchronous>, transform_indices = @transform_6, window_bounds = array<i64: 8, 1>}, {pipeline_mode = #tpu.pipeline_mode<synchronous>, transform_indices = @transform_7, window_bounds = array<i64: 8, 1>}, {transform_indices = @transform_8, window_bounds = array<i64: 2, 8, 256>}]} {
    %c0 = arith.constant 0 : index
    %c0_0 = arith.constant 0 : index
    %0 = vector.load %arg2[%c0, %c0_0] : memref<8x512xf32, #tpu.memory_space<vmem>>, vector<8x512xf32>
    %1 = vector.extract_strided_slice %0 {offsets = [0, 0], sizes = [1, 512], strides = [1, 1]} : vector<8x512xf32> to vector<1x512xf32>
    %2 = vector.extract_strided_slice %0 {offsets = [1, 0], sizes = [1, 512], strides = [1, 1]} : vector<8x512xf32> to vector<1x512xf32>
    %3 = vector.extract_strided_slice %0 {offsets = [2, 0], sizes = [1, 512], strides = [1, 1]} : vector<8x512xf32> to vector<1x512xf32>
    %4 = vector.extract_strided_slice %0 {offsets = [3, 0], sizes = [1, 512], strides = [1, 1]} : vector<8x512xf32> to vector<1x512xf32>
    %5 = vector.extract_strided_slice %0 {offsets = [4, 0], sizes = [1, 512], strides = [1, 1]} : vector<8x512xf32> to vector<1x512xf32>
    %6 = vector.extract_strided_slice %0 {offsets = [5, 0], sizes = [1, 512], strides = [1, 1]} : vector<8x512xf32> to vector<1x512xf32>
    %7 = vector.extract_strided_slice %0 {offsets = [6, 0], sizes = [1, 512], strides = [1, 1]} : vector<8x512xf32> to vector<1x512xf32>
    %8 = vector.extract_strided_slice %0 {offsets = [7, 0], sizes = [1, 512], strides = [1, 1]} : vector<8x512xf32> to vector<1x512xf32>
    %c0_1 = arith.constant 0 : index
    %c0_2 = arith.constant 0 : index
    %9 = vector.load %arg3[%c0_1, %c0_2] : memref<8x72xf32, #tpu.memory_space<vmem>>, vector<8x72xf32>
    %c0_3 = arith.constant 0 : index
    %c0_4 = arith.constant 0 : index
    %10 = vector.load %arg4[%c0_3, %c0_4] : memref<8x72xf32, #tpu.memory_space<vmem>>, vector<8x72xf32>
    %c0_5 = arith.constant 0 : index
    %c0_6 = arith.constant 0 : index
    %11 = vector.load %arg5[%c0_5, %c0_6] : memref<8x1xf32, #tpu.memory_space<vmem>>, vector<8x1xf32>
    %c0_7 = arith.constant 0 : index
    %c0_8 = arith.constant 0 : index
    %12 = vector.load %arg6[%c0_7, %c0_8] : memref<8x1xf32, #tpu.memory_space<vmem>>, vector<8x1xf32>
    %c0_9 = arith.constant 0 : index
    %c0_10 = arith.constant 0 : index
    %13 = vector.load %arg7[%c0_9, %c0_10] : memref<8x1xf32, #tpu.memory_space<vmem>>, vector<8x1xf32>
    %c0_11 = arith.constant 0 : index
    %c0_12 = arith.constant 0 : index
    %14 = vector.load %arg8[%c0_11, %c0_12] : memref<8x1xf32, #tpu.memory_space<vmem>>, vector<8x1xf32>
    %c0_13 = arith.constant 0 : index
    %c0_14 = arith.constant 0 : index
    %c0_15 = arith.constant 0 : index
    %15 = vector.load %arg1[%c0_13, %c0_14, %c0_15] : memref<2x8x256xf32, #tpu.memory_space<vmem>>, vector<1x8x256xf32>
    %16 = vector.shape_cast %15 : vector<1x8x256xf32> to vector<8x256xf32>
    %c1 = arith.constant 1 : index
    %c0_16 = arith.constant 0 : index
    %c0_17 = arith.constant 0 : index
    %17 = vector.load %arg1[%c1, %c0_16, %c0_17] : memref<2x8x256xf32, #tpu.memory_space<vmem>>, vector<1x8x256xf32>
    %18 = vector.shape_cast %17 : vector<1x8x256xf32> to vector<8x256xf32>
    %19 = tpu.concatenate %16, %18 in 1 : vector<8x256xf32>, vector<8x256xf32> -> vector<8x512xf32>
    %c17_i32 = arith.constant 17 : i32
    %20 = tpu.dynamic_rotate %19 by %c17_i32 dim 1 : vector<8x512xf32>, i32 -> vector<8x512xf32>
    %21 = vector.broadcast %1 : vector<1x512xf32> to vector<8x512xf32>
    %22 = arith.mulf %20, %21 : vector<8x512xf32>
    %c16_i32 = arith.constant 16 : i32
    %23 = tpu.dynamic_rotate %19 by %c16_i32 dim 1 : vector<8x512xf32>, i32 -> vector<8x512xf32>
    %24 = vector.broadcast %2 : vector<1x512xf32> to vector<8x512xf32>
    %25 = arith.mulf %23, %24 : vector<8x512xf32>
    %c15_i32 = arith.constant 15 : i32
    %26 = tpu.dynamic_rotate %19 by %c15_i32 dim 1 : vector<8x512xf32>, i32 -> vector<8x512xf32>
    %27 = vector.broadcast %3 : vector<1x512xf32> to vector<8x512xf32>
    %28 = arith.mulf %26, %27 : vector<8x512xf32>
    %c1_i32 = arith.constant 1 : i32
    %29 = tpu.dynamic_rotate %19 by %c1_i32 dim 1 : vector<8x512xf32>, i32 -> vector<8x512xf32>
    %30 = vector.broadcast %4 : vector<1x512xf32> to vector<8x512xf32>
    %31 = arith.mulf %29, %30 : vector<8x512xf32>
    %c511_i32 = arith.constant 511 : i32
    %32 = tpu.dynamic_rotate %19 by %c511_i32 dim 1 : vector<8x512xf32>, i32 -> vector<8x512xf32>
    %33 = vector.broadcast %5 : vector<1x512xf32> to vector<8x512xf32>
    %34 = arith.mulf %32, %33 : vector<8x512xf32>
    %c497_i32 = arith.constant 497 : i32
    %35 = tpu.dynamic_rotate %19 by %c497_i32 dim 1 : vector<8x512xf32>, i32 -> vector<8x512xf32>
    %36 = vector.broadcast %6 : vector<1x512xf32> to vector<8x512xf32>
    %37 = arith.mulf %35, %36 : vector<8x512xf32>
    %c496_i32 = arith.constant 496 : i32
    %38 = tpu.dynamic_rotate %19 by %c496_i32 dim 1 : vector<8x512xf32>, i32 -> vector<8x512xf32>
    %39 = vector.broadcast %7 : vector<1x512xf32> to vector<8x512xf32>
    %40 = arith.mulf %38, %39 : vector<8x512xf32>
    %c495_i32 = arith.constant 495 : i32
    %41 = tpu.dynamic_rotate %19 by %c495_i32 dim 1 : vector<8x512xf32>, i32 -> vector<8x512xf32>
    %42 = vector.broadcast %8 : vector<1x512xf32> to vector<8x512xf32>
    %43 = arith.mulf %41, %42 : vector<8x512xf32>
    %44 = tpu.concatenate %22, %25, %28, %31, %19, %34, %37, %40, %43 in 0 : vector<8x512xf32>, vector<8x512xf32>, vector<8x512xf32>, vector<8x512xf32>, vector<8x512xf32>, vector<8x512xf32>, vector<8x512xf32>, vector<8x512xf32>, vector<8x512xf32> -> vector<72x512xf32>
    %cst = arith.constant dense<0.000000e+00> : vector<8x512xf32>
    %45 = tpu.matmul %9, %44, %cst {dimension_numbers = #tpu.dot_dimension_numbers<[1], [0], [0], [1], [0, 0, 1, 1], [], []>} : vector<8x72xf32>, vector<72x512xf32>, vector<8x512xf32> -> vector<8x512xf32>
    %46 = vector.extract_strided_slice %45 {offsets = [0, 0], sizes = [8, 256], strides = [1, 1]} : vector<8x512xf32> to vector<8x256xf32>
    %47 = vector.shape_cast %46 : vector<8x256xf32> to vector<1x8x256xf32>
    %cst_18 = arith.constant dense<0.000000e+00> : vector<1xf32>
    %48 = vector.multi_reduction <add>, %47, %cst_18 [1, 2] : vector<1x8x256xf32> to vector<1xf32>
    %49 = vector.shape_cast %48 : vector<1xf32> to vector<1x1x1xf32>
    %50 = vector.extract %49[0, 0, 0] : f32 from vector<1x1x1xf32>
    %cst_19 = arith.constant 4.8828125E-4 : f32
    %51 = arith.mulf %50, %cst_19 : f32
    %52 = vector.broadcast %51 : f32 to vector<8x256xf32>
    %53 = arith.subf %46, %52 : vector<8x256xf32>
    %54 = arith.mulf %53, %53 : vector<8x256xf32>
    %55 = vector.shape_cast %54 : vector<8x256xf32> to vector<1x8x256xf32>
    %cst_20 = arith.constant dense<0.000000e+00> : vector<1xf32>
    %56 = vector.multi_reduction <add>, %55, %cst_20 [1, 2] : vector<1x8x256xf32> to vector<1xf32>
    %57 = vector.shape_cast %56 : vector<1xf32> to vector<1x1x1xf32>
    %58 = vector.extract %57[0, 0, 0] : f32 from vector<1x1x1xf32>
    %cst_21 = arith.constant 4.8828125E-4 : f32
    %59 = arith.mulf %58, %cst_21 : f32
    %cst_22 = arith.constant 0.000000e+00 : f32
    %60 = arith.maximumf %59, %cst_22 : f32
    %cst_23 = arith.constant 9.99999974E-6 : f32
    %61 = arith.addf %60, %cst_23 : f32
    %62 = math.rsqrt %61 : f32
    %63 = vector.broadcast %62 : f32 to vector<8x1xf32>
    %64 = arith.mulf %11, %63 : vector<8x1xf32>
    %65 = vector.broadcast %64 : vector<8x1xf32> to vector<8x256xf32>
    %66 = arith.mulf %53, %65 : vector<8x256xf32>
    %67 = vector.broadcast %12 : vector<8x1xf32> to vector<8x256xf32>
    %68 = arith.addf %66, %67 : vector<8x256xf32>
    %cst_24 = arith.constant 5.000000e-01 : f32
    %69 = vector.broadcast %cst_24 : f32 to vector<8x256xf32>
    %70 = arith.mulf %69, %68 : vector<8x256xf32>
    %71 = arith.mulf %68, %68 : vector<8x256xf32>
    %72 = arith.mulf %71, %68 : vector<8x256xf32>
    %cst_25 = arith.constant 4.471500e-02 : f32
    %73 = vector.broadcast %cst_25 : f32 to vector<8x256xf32>
    %74 = arith.mulf %73, %72 : vector<8x256xf32>
    %75 = arith.addf %68, %74 : vector<8x256xf32>
    %cst_26 = arith.constant 0.797884583 : f32
    %76 = vector.broadcast %cst_26 : f32 to vector<8x256xf32>
    %77 = arith.mulf %76, %75 : vector<8x256xf32>
    %78 = math.tanh %77 : vector<8x256xf32>
    %cst_27 = arith.constant 1.000000e+00 : f32
    %79 = vector.broadcast %cst_27 : f32 to vector<8x256xf32>
    %80 = arith.addf %79, %78 : vector<8x256xf32>
    %81 = arith.mulf %70, %80 : vector<8x256xf32>
    %82 = vector.extract_strided_slice %45 {offsets = [0, 256], sizes = [8, 256], strides = [1, 1]} : vector<8x512xf32> to vector<8x256xf32>
    %83 = vector.shape_cast %82 : vector<8x256xf32> to vector<1x8x256xf32>
    %cst_28 = arith.constant dense<0.000000e+00> : vector<1xf32>
    %84 = vector.multi_reduction <add>, %83, %cst_28 [1, 2] : vector<1x8x256xf32> to vector<1xf32>
    %85 = vector.shape_cast %84 : vector<1xf32> to vector<1x1x1xf32>
    %86 = vector.extract %85[0, 0, 0] : f32 from vector<1x1x1xf32>
    %cst_29 = arith.constant 4.8828125E-4 : f32
    %87 = arith.mulf %86, %cst_29 : f32
    %88 = vector.broadcast %87 : f32 to vector<8x256xf32>
    %89 = arith.subf %82, %88 : vector<8x256xf32>
    %90 = arith.mulf %89, %89 : vector<8x256xf32>
    %91 = vector.shape_cast %90 : vector<8x256xf32> to vector<1x8x256xf32>
    %cst_30 = arith.constant dense<0.000000e+00> : vector<1xf32>
    %92 = vector.multi_reduction <add>, %91, %cst_30 [1, 2] : vector<1x8x256xf32> to vector<1xf32>
    %93 = vector.shape_cast %92 : vector<1xf32> to vector<1x1x1xf32>
    %94 = vector.extract %93[0, 0, 0] : f32 from vector<1x1x1xf32>
    %cst_31 = arith.constant 4.8828125E-4 : f32
    %95 = arith.mulf %94, %cst_31 : f32
    %cst_32 = arith.constant 0.000000e+00 : f32
    %96 = arith.maximumf %95, %cst_32 : f32
    %cst_33 = arith.constant 9.99999974E-6 : f32
    %97 = arith.addf %96, %cst_33 : f32
    %98 = math.rsqrt %97 : f32
    %99 = vector.broadcast %98 : f32 to vector<8x1xf32>
    %100 = arith.mulf %11, %99 : vector<8x1xf32>
    %101 = vector.broadcast %100 : vector<8x1xf32> to vector<8x256xf32>
    %102 = arith.mulf %89, %101 : vector<8x256xf32>
    %103 = vector.broadcast %12 : vector<8x1xf32> to vector<8x256xf32>
    %104 = arith.addf %102, %103 : vector<8x256xf32>
    %cst_34 = arith.constant 5.000000e-01 : f32
    %105 = vector.broadcast %cst_34 : f32 to vector<8x256xf32>
    %106 = arith.mulf %105, %104 : vector<8x256xf32>
    %107 = arith.mulf %104, %104 : vector<8x256xf32>
    %108 = arith.mulf %107, %104 : vector<8x256xf32>
    %cst_35 = arith.constant 4.471500e-02 : f32
    %109 = vector.broadcast %cst_35 : f32 to vector<8x256xf32>
    %110 = arith.mulf %109, %108 : vector<8x256xf32>
    %111 = arith.addf %104, %110 : vector<8x256xf32>
    %cst_36 = arith.constant 0.797884583 : f32
    %112 = vector.broadcast %cst_36 : f32 to vector<8x256xf32>
    %113 = arith.mulf %112, %111 : vector<8x256xf32>
    %114 = math.tanh %113 : vector<8x256xf32>
    %cst_37 = arith.constant 1.000000e+00 : f32
    %115 = vector.broadcast %cst_37 : f32 to vector<8x256xf32>
    %116 = arith.addf %115, %114 : vector<8x256xf32>
    %117 = arith.mulf %106, %116 : vector<8x256xf32>
    %118 = tpu.concatenate %81, %117 in 1 : vector<8x256xf32>, vector<8x256xf32> -> vector<8x512xf32>
    %c17_i32_38 = arith.constant 17 : i32
    %119 = tpu.dynamic_rotate %118 by %c17_i32_38 dim 1 : vector<8x512xf32>, i32 -> vector<8x512xf32>
    %120 = vector.broadcast %1 : vector<1x512xf32> to vector<8x512xf32>
    %121 = arith.mulf %119, %120 : vector<8x512xf32>
    %c16_i32_39 = arith.constant 16 : i32
    %122 = tpu.dynamic_rotate %118 by %c16_i32_39 dim 1 : vector<8x512xf32>, i32 -> vector<8x512xf32>
    %123 = vector.broadcast %2 : vector<1x512xf32> to vector<8x512xf32>
    %124 = arith.mulf %122, %123 : vector<8x512xf32>
    %c15_i32_40 = arith.constant 15 : i32
    %125 = tpu.dynamic_rotate %118 by %c15_i32_40 dim 1 : vector<8x512xf32>, i32 -> vector<8x512xf32>
    %126 = vector.broadcast %3 : vector<1x512xf32> to vector<8x512xf32>
    %127 = arith.mulf %125, %126 : vector<8x512xf32>
    %c1_i32_41 = arith.constant 1 : i32
    %128 = tpu.dynamic_rotate %118 by %c1_i32_41 dim 1 : vector<8x512xf32>, i32 -> vector<8x512xf32>
    %129 = vector.broadcast %4 : vector<1x512xf32> to vector<8x512xf32>
    %130 = arith.mulf %128, %129 : vector<8x512xf32>
    %c511_i32_42 = arith.constant 511 : i32
    %131 = tpu.dynamic_rotate %118 by %c511_i32_42 dim 1 : vector<8x512xf32>, i32 -> vector<8x512xf32>
    %132 = vector.broadcast %5 : vector<1x512xf32> to vector<8x512xf32>
    %133 = arith.mulf %131, %132 : vector<8x512xf32>
    %c497_i32_43 = arith.constant 497 : i32
    %134 = tpu.dynamic_rotate %118 by %c497_i32_43 dim 1 : vector<8x512xf32>, i32 -> vector<8x512xf32>
    %135 = vector.broadcast %6 : vector<1x512xf32> to vector<8x512xf32>
    %136 = arith.mulf %134, %135 : vector<8x512xf32>
    %c496_i32_44 = arith.constant 496 : i32
    %137 = tpu.dynamic_rotate %118 by %c496_i32_44 dim 1 : vector<8x512xf32>, i32 -> vector<8x512xf32>
    %138 = vector.broadcast %7 : vector<1x512xf32> to vector<8x512xf32>
    %139 = arith.mulf %137, %138 : vector<8x512xf32>
    %c495_i32_45 = arith.constant 495 : i32
    %140 = tpu.dynamic_rotate %118 by %c495_i32_45 dim 1 : vector<8x512xf32>, i32 -> vector<8x512xf32>
    %141 = vector.broadcast %8 : vector<1x512xf32> to vector<8x512xf32>
    %142 = arith.mulf %140, %141 : vector<8x512xf32>
    %143 = tpu.concatenate %121, %124, %127, %130, %118, %133, %136, %139, %142 in 0 : vector<8x512xf32>, vector<8x512xf32>, vector<8x512xf32>, vector<8x512xf32>, vector<8x512xf32>, vector<8x512xf32>, vector<8x512xf32>, vector<8x512xf32>, vector<8x512xf32> -> vector<72x512xf32>
    %cst_46 = arith.constant dense<0.000000e+00> : vector<8x512xf32>
    %144 = tpu.matmul %10, %143, %cst_46 {dimension_numbers = #tpu.dot_dimension_numbers<[1], [0], [0], [1], [0, 0, 1, 1], [], []>} : vector<8x72xf32>, vector<72x512xf32>, vector<8x512xf32> -> vector<8x512xf32>
    %145 = vector.extract_strided_slice %144 {offsets = [0, 0], sizes = [8, 256], strides = [1, 1]} : vector<8x512xf32> to vector<8x256xf32>
    %146 = vector.shape_cast %145 : vector<8x256xf32> to vector<1x8x256xf32>
    %cst_47 = arith.constant dense<0.000000e+00> : vector<1xf32>
    %147 = vector.multi_reduction <add>, %146, %cst_47 [1, 2] : vector<1x8x256xf32> to vector<1xf32>
    %148 = vector.shape_cast %147 : vector<1xf32> to vector<1x1x1xf32>
    %149 = vector.extract %148[0, 0, 0] : f32 from vector<1x1x1xf32>
    %cst_48 = arith.constant 4.8828125E-4 : f32
    %150 = arith.mulf %149, %cst_48 : f32
    %151 = vector.broadcast %150 : f32 to vector<8x256xf32>
    %152 = arith.subf %145, %151 : vector<8x256xf32>
    %153 = arith.mulf %152, %152 : vector<8x256xf32>
    %154 = vector.shape_cast %153 : vector<8x256xf32> to vector<1x8x256xf32>
    %cst_49 = arith.constant dense<0.000000e+00> : vector<1xf32>
    %155 = vector.multi_reduction <add>, %154, %cst_49 [1, 2] : vector<1x8x256xf32> to vector<1xf32>
    %156 = vector.shape_cast %155 : vector<1xf32> to vector<1x1x1xf32>
    %157 = vector.extract %156[0, 0, 0] : f32 from vector<1x1x1xf32>
    %cst_50 = arith.constant 4.8828125E-4 : f32
    %158 = arith.mulf %157, %cst_50 : f32
    %cst_51 = arith.constant 0.000000e+00 : f32
    %159 = arith.maximumf %158, %cst_51 : f32
    %cst_52 = arith.constant 9.99999974E-6 : f32
    %160 = arith.addf %159, %cst_52 : f32
    %161 = math.rsqrt %160 : f32
    %162 = vector.broadcast %161 : f32 to vector<8x1xf32>
    %163 = arith.mulf %13, %162 : vector<8x1xf32>
    %164 = vector.broadcast %163 : vector<8x1xf32> to vector<8x256xf32>
    %165 = arith.mulf %152, %164 : vector<8x256xf32>
    %166 = vector.broadcast %14 : vector<8x1xf32> to vector<8x256xf32>
    %167 = arith.addf %165, %166 : vector<8x256xf32>
    %c0_53 = arith.constant 0 : index
    %c0_54 = arith.constant 0 : index
    %c0_55 = arith.constant 0 : index
    %168 = vector.load %arg9[%c0_53, %c0_54, %c0_55] : memref<2x8x256xf32, #tpu.memory_space<vmem>>, vector<1x8x256xf32>
    %169 = vector.shape_cast %168 : vector<1x8x256xf32> to vector<8x256xf32>
    %170 = vector.shape_cast %167 : vector<8x256xf32> to vector<1x8x256xf32>
    tpu.vector_store %arg9[%c0_53, %c0_54, %c0_55], %170 {strides = array<i32>} : memref<2x8x256xf32, #tpu.memory_space<vmem>>, vector<1x8x256xf32>,
    %171 = vector.extract_strided_slice %144 {offsets = [0, 256], sizes = [8, 256], strides = [1, 1]} : vector<8x512xf32> to vector<8x256xf32>
    %172 = vector.shape_cast %171 : vector<8x256xf32> to vector<1x8x256xf32>
    %cst_56 = arith.constant dense<0.000000e+00> : vector<1xf32>
    %173 = vector.multi_reduction <add>, %172, %cst_56 [1, 2] : vector<1x8x256xf32> to vector<1xf32>
    %174 = vector.shape_cast %173 : vector<1xf32> to vector<1x1x1xf32>
    %175 = vector.extract %174[0, 0, 0] : f32 from vector<1x1x1xf32>
    %cst_57 = arith.constant 4.8828125E-4 : f32
    %176 = arith.mulf %175, %cst_57 : f32
    %177 = vector.broadcast %176 : f32 to vector<8x256xf32>
    %178 = arith.subf %171, %177 : vector<8x256xf32>
    %179 = arith.mulf %178, %178 : vector<8x256xf32>
    %180 = vector.shape_cast %179 : vector<8x256xf32> to vector<1x8x256xf32>
    %cst_58 = arith.constant dense<0.000000e+00> : vector<1xf32>
    %181 = vector.multi_reduction <add>, %180, %cst_58 [1, 2] : vector<1x8x256xf32> to vector<1xf32>
    %182 = vector.shape_cast %181 : vector<1xf32> to vector<1x1x1xf32>
    %183 = vector.extract %182[0, 0, 0] : f32 from vector<1x1x1xf32>
    %cst_59 = arith.constant 4.8828125E-4 : f32
    %184 = arith.mulf %183, %cst_59 : f32
    %cst_60 = arith.constant 0.000000e+00 : f32
    %185 = arith.maximumf %184, %cst_60 : f32
    %cst_61 = arith.constant 9.99999974E-6 : f32
    %186 = arith.addf %185, %cst_61 : f32
    %187 = math.rsqrt %186 : f32
    %188 = vector.broadcast %187 : f32 to vector<8x1xf32>
    %189 = arith.mulf %13, %188 : vector<8x1xf32>
    %190 = vector.broadcast %189 : vector<8x1xf32> to vector<8x256xf32>
    %191 = arith.mulf %178, %190 : vector<8x256xf32>
    %192 = vector.broadcast %14 : vector<8x1xf32> to vector<8x256xf32>
    %193 = arith.addf %191, %192 : vector<8x256xf32>
    %c1_62 = arith.constant 1 : index
    %c0_63 = arith.constant 0 : index
    %c0_64 = arith.constant 0 : index
    %194 = vector.load %arg9[%c1_62, %c0_63, %c0_64] : memref<2x8x256xf32, #tpu.memory_space<vmem>>, vector<1x8x256xf32>
    %195 = vector.shape_cast %194 : vector<1x8x256xf32> to vector<8x256xf32>
    %196 = vector.shape_cast %193 : vector<8x256xf32> to vector<1x8x256xf32>
    tpu.vector_store %arg9[%c1_62, %c0_63, %c0_64], %196 {strides = array<i32>} : memref<2x8x256xf32, #tpu.memory_space<vmem>>, vector<1x8x256xf32>,
    return
  }
  func.func @transform_0(%arg0: i32) -> (i32, i32, i32) {
    %c0_i32 = arith.constant 0 : i32
    %c0_i32_0 = arith.constant 0 : i32
    %c0_i32_1 = arith.constant 0 : i32
    return %arg0, %c0_i32, %c0_i32_0 : i32, i32, i32
  }
  func.func @transform_1(%arg0: i32) -> (i32, i32) {
    %c0_i32 = arith.constant 0 : i32
    %c0_i32_0 = arith.constant 0 : i32
    %c0_i32_1 = arith.constant 0 : i32
    return %c0_i32, %c0_i32_0 : i32, i32
  }
  func.func @transform_2(%arg0: i32) -> (i32, i32) {
    %c0_i32 = arith.constant 0 : i32
    %c0_i32_0 = arith.constant 0 : i32
    %c0_i32_1 = arith.constant 0 : i32
    return %c0_i32, %c0_i32_0 : i32, i32
  }
  func.func @transform_3(%arg0: i32) -> (i32, i32) {
    %c0_i32 = arith.constant 0 : i32
    %c0_i32_0 = arith.constant 0 : i32
    %c0_i32_1 = arith.constant 0 : i32
    return %c0_i32, %c0_i32_0 : i32, i32
  }
  func.func @transform_4(%arg0: i32) -> (i32, i32) {
    %c0_i32 = arith.constant 0 : i32
    %c0_i32_0 = arith.constant 0 : i32
    %c0_i32_1 = arith.constant 0 : i32
    return %c0_i32, %c0_i32_0 : i32, i32
  }
  func.func @transform_5(%arg0: i32) -> (i32, i32) {
    %c0_i32 = arith.constant 0 : i32
    %c0_i32_0 = arith.constant 0 : i32
    %c0_i32_1 = arith.constant 0 : i32
    return %c0_i32, %c0_i32_0 : i32, i32
  }
  func.func @transform_6(%arg0: i32) -> (i32, i32) {
    %c0_i32 = arith.constant 0 : i32
    %c0_i32_0 = arith.constant 0 : i32
    %c0_i32_1 = arith.constant 0 : i32
    return %c0_i32, %c0_i32_0 : i32, i32
  }
  func.func @transform_7(%arg0: i32) -> (i32, i32) {
    %c0_i32 = arith.constant 0 : i32
    %c0_i32_0 = arith.constant 0 : i32
    %c0_i32_1 = arith.constant 0 : i32
    return %c0_i32, %c0_i32_0 : i32, i32
  }
  func.func @transform_8(%arg0: i32) -> (i32, i32, i32) {
    %c0_i32 = arith.constant 0 : i32
    %c0_i32_0 = arith.constant 0 : i32
    %c0_i32_1 = arith.constant 0 : i32
    return %arg0, %c0_i32, %c0_i32_0 : i32, i32, i32
  }
}

</mosaic_0001>

<bundles_post_ra>
// kernel: tpu_custom_call.1
= control target key start
LH: loop header
LB: loop body
LE: loop exit
PB: predicated region body
PF: predicated region fallthrough
CT: control target
= control target key end

     0   :  { %13 = vsyncpa [#allocation3], 0  ;;  %s1986_s0 = inlined_call_operand.vmem [shape: f32[2,8,256], index: 0, kind: input, shape index: {}]   ;;  %s1987_s1 = inlined_call_operand.hbm [shape: f32[8,512], index: 1, kind: input, shape index: {}]   ;;  %s1988_s2 = inlined_call_operand.vmem [shape: f32[8,72], index: 2, kind: input, shape index: {}]   ;;  %s1989_s3 = inlined_call_operand.hbm [shape: f32[8,72], index: 3, kind: input, shape index: {}]   ;;  %s1990_s4 = inlined_call_operand.vmem [shape: f32[8,1], index: 4, kind: input, shape index: {}]   ;;  %s1991_s5 = inlined_call_operand.vmem [shape: f32[8,1], index: 5, kind: input, shape index: {}]   ;;  %s1992_s6 = inlined_call_operand.vmem [shape: f32[8,1], index: 6, kind: input, shape index: {}]   ;;  %s1993_s7 = inlined_call_operand.vmem [shape: f32[8,1], index: 7, kind: input, shape index: {}]   ;;  %s1994_s8 = inlined_call_operand.hbm [shape: f32[2,8,256], index: 8, kind: output, shape index: {}]  }
   0x1   :  { %14 = vsyncpa [#allocation6], 0 }
   0x2   :  { %15 = vsyncpa [#allocation4], 0  ;;  %s1194_s27 = smov [#allocation2]   ;;  %s1195_s29 = smov [#allocation5]  }
   0x3   :  { %s24_s28 = sshll.u32 %s1194_s27, 4  ;;  %s36_s30 = sshll.u32 %s1195_s29, 4  ;;  %s25_s28 = int_to_ptr.vmem [resolvable:$true] %s24_s28  ;;  %s37_s30 = int_to_ptr.vmem [resolvable:$true] %s36_s30 }
   0x4   :  { %s1122_s11 = scalar_lea.hbm %s1987_s1, 512 }
   0x5   :  { %p1123_p0 = scmp.ne.s32.totalorder %s1987_s1, %s1122_s11  ;;  %p1126_p1 = scmp.lt.u32.totalorder %s1122_s11, %s1987_s1 }
   0x7   :  { %p1128_p2 = pnand %p1126_p1, %p1123_p0 }
   0x9   :  { %1131 = shalt.err (!%p1128_p2)
}
   0xa   :  { %s1132_s16 = scalar_lea.vmem %s25_s28, 512  ;;  %p1137_p4 = scmp.lt.s32.totalorder %s25_s28, %s25_s28 }
   0xb   :  { %p1133_p3 = scmp.ne.s32.totalorder %s25_s28, %s1132_s16  ;;  %p1138_p5 = scmp.lt.s32.totalorder %s1132_s16, %s1132_s16 }
   0xd   :  { %p1139_p6 = por %p1138_p5, %p1137_p4 }
   0xf   :  { %p1140_p7 = pnand %p1139_p6, %p1133_p3 }
  0x11   :  { %1143 = shalt.err (!%p1140_p7)
}
  0x12   :  { %27 = dma.hbm_to_vmem [thread:$0]  %s1987_s1, 512, %s25_s28, [#allocation3]  }
  0x13   :  { %s1144_s21 = scalar_lea.hbm %s1989_s3, 128 }
  0x14   :  { %p1145_p8 = scmp.ne.s32.totalorder %s1989_s3, %s1144_s21  ;;  %p1148_p9 = scmp.lt.u32.totalorder %s1144_s21, %s1989_s3 }
  0x16   :  { %p1150_p10 = pnand %p1148_p9, %p1145_p8 }
  0x18   :  { %1153 = shalt.err (!%p1150_p10)
}
  0x19   :  { %s1154_s26 = scalar_lea.vmem %s37_s30, 128  ;;  %p1159_p12 = scmp.lt.s32.totalorder %s37_s30, %s37_s30 }
  0x1a   :  { %p1155_p11 = scmp.ne.s32.totalorder %s37_s30, %s1154_s26  ;;  %p1160_p13 = scmp.lt.s32.totalorder %s1154_s26, %s1154_s26 }
  0x1c   :  { %p1161_p0 = por %p1160_p13, %p1159_p12 }
  0x1e   :  { %p1162_p1 = pnand %p1161_p0, %p1155_p11 }
  0x20   :  { %1165 = shalt.err (!%p1162_p1)
}
  0x21   :  { %39 = dma.hbm_to_vmem [thread:$0]  %s1989_s3, 128, %s37_s30, [#allocation6]  }
  0x22   :  { %1188 = dma.done.wait [#allocation3], 512  }
  0x23   :  { %1189 = vsyncadd [#allocation3], 4294966784 }
  0x24   :  { %1190 = dma.done.wait [#allocation6], 128  }
  0x25   :  { %1191 = vsyncadd [#allocation6], 4294967168  ;;  %v1281_v0 = vld [vmem:[%s1986_s0] sm:$0xff]  ;;  %s1196_s9 = smov 16   ;;  %s1197_s10 = smov 17   ;;  %v1290_v1 = vld [vmem:[%s1986_s0 + $0x8] sm:$0xff]  ;;  %v77_v5 = vlaneseq }
  0x26   :  { %104 = vrot.lane.b32.xlu1 %v1281_v0, %s1196_s9  ;;  %69 = vrot.lane.b32.xlu0 %v1281_v0, %s1197_s10  ;;  %v1299_v2 = vld [vmem:[%s1986_s0 + $0x18] sm:$0xff]  ;;  %s1198_s13 = smov 15   ;;  %s1199_s14 = smov 1   ;;  %v1320_v3 = vld [vmem:[%s1986_s0 + $0x10] sm:$0xff]  ;;  %v1203_v4 = vmov 0.0   ;;  %v1374_v10 = vld [vmem:[#allocation2 + $0x8] sm:$0xff] }
  0x27   :  { %s1200_s17 = smov 127   ;;  %s1201_s18 = smov 113   ;;  %403 = vmatprep.mubr.f32.mxu0 %v1203_v4  ;;  %474 = vmatprep.mubr.f32.mxu1 %v1203_v4  ;;  %v1364_v6 = vshrl.u32 %v77_v5, 7  ;;  %v1366_v7 = vand.u32 127, %v77_v5  ;;  %v1386_v15 = vld [vmem:[#allocation2] sm:$0xff]  ;;  %vm335_vm8 = vcmask 588800  }
  0x28   :  { %s1202_s19 = smov 112   ;;  %s1204_s0 = smov 111  }
  0x29   :  { %v1369_v8 = vsub.s32 1, %v1364_v6  ;;  %v1372_v9 = vsub.s32 0, %v1364_v6  ;;  %vm112_vm0 = vcmp.lt.s32.totalorder %v1366_v7, 16  ;;  %vm79_vm1 = vcmp.lt.s32.totalorder %v1366_v7, 17  ;;  %s1206_s25 = smov 0.0  }
  0x2a   :  { %106 = vrot.lane.b32.xlu1 %v1290_v1, %s1196_s9  ;;  %71 = vrot.lane.b32.xlu0 %v1290_v1, %s1197_s10  ;;  %v1421_v31 = vsub.s32 2, %v1364_v6  ;;  %v1424_v32 = vsub.s32 3, %v1364_v6  ;;  %vm145_vm2 = vcmp.lt.s32.totalorder %v1366_v7, 15  ;;  %vm178_vm3 = vcmp.lt.s32.totalorder %v1366_v7, 1 }
  0x2b   :  { %v1380_v13 = vrot.slane %v1374_v10, %v1372_v9  ;;  %v1384_v14 = vrot.slane %v1374_v10, %v1369_v8  ;;  %v1400_v20 = vrot.slane %v1386_v15, %v1369_v8  ;;  %v1404_v21 = vrot.slane %v1386_v15, %v1372_v9 }
  0x2c   :  { %v1431_v36 = vrot.slane %v1374_v10, %v1421_v31  ;;  %v1436_v37 = vrot.slane %v1374_v10, %v1424_v32  ;;  %v1448_v42 = vrot.slane %v1386_v15, %v1424_v32  ;;  %v1454_v45 = vrot.slane %v1386_v15, %v1421_v31 }
  0x2d   :  { %v1457_v46 = vsub.s32 4, %v1364_v6  ;;  %vm211_vm4 = vcmp.lt.s32.totalorder %v1366_v7, 127  ;;  %vm244_vm5 = vcmp.lt.s32.totalorder %v1366_v7, 113  ;;  %vm277_vm6 = vcmp.lt.s32.totalorder %v1366_v7, 112 }
  0x2e   :  { %110 = vrot.lane.b32.xlu1 %v1299_v2, %s1196_s9  ;;  %75 = vrot.lane.b32.xlu0 %v1299_v2, %s1197_s10  ;;  %vm310_vm7 = vcmp.lt.s32.totalorder %v1366_v7, 111 }
  0x2f   :  { %v1474_v54 = vrot.slane %v1374_v10, %v1457_v46  ;;  %v1484_v60 = vrot.slane %v1386_v15, %v1457_v46 }
  0x32   :  { %139 = vrot.lane.b32.xlu1 %v1290_v1, %s1198_s13  ;;  %137 = vrot.lane.b32.xlu0 %v1281_v0, %s1198_s13 }
  0x36   :  { %172 = vrot.lane.b32.xlu1 %v1290_v1, %s1199_s14  ;;  %170 = vrot.lane.b32.xlu0 %v1281_v0, %s1199_s14 }
  0x3a   :  { %176 = vrot.lane.b32.xlu1 %v1299_v2, %s1199_s14  ;;  %143 = vrot.lane.b32.xlu0 %v1299_v2, %s1198_s13 }
  0x3e   :  { %207 = vrot.lane.b32.xlu1 %v1320_v3, %s1200_s17  ;;  %205 = vrot.lane.b32.xlu0 %v1290_v1, %s1200_s17 }
  0x42   :  { %238 = vrot.lane.b32.xlu1 %v1290_v1, %s1201_s18  ;;  %203 = vrot.lane.b32.xlu0 %v1281_v0, %s1200_s17 }
  0x46   :  { %271 = vrot.lane.b32.xlu1 %v1290_v1, %s1202_s19  ;;  %240 = vrot.lane.b32.xlu0 %v1320_v3, %s1201_s18 }
  0x4a   :  { %236 = vrot.lane.b32.xlu1 %v1281_v0, %s1201_s18  ;;  %273 = vrot.lane.b32.xlu0 %v1320_v3, %s1202_s19 }
  0x4e   :  { %304 = vrot.lane.b32.xlu1 %v1290_v1, %s1204_s0  ;;  %269 = vrot.lane.b32.xlu0 %v1281_v0, %s1202_s19 }
  0x52   :  { %302 = vrot.lane.b32.xlu1 %v1281_v0, %s1204_s0  ;;  %306 = vrot.lane.b32.xlu0 %v1320_v3, %s1204_s0 }
  0x56   :  { %108 = vrot.lane.b32.xlu1 %v1320_v3, %s1196_s9  ;;  %73 = vrot.lane.b32.xlu0 %v1320_v3, %s1197_s10 }
  0x5a   :  { %174 = vrot.lane.b32.xlu1 %v1320_v3, %s1199_s14  ;;  %141 = vrot.lane.b32.xlu0 %v1320_v3, %s1198_s13 }
  0x5e   :  { %242 = vrot.lane.b32.xlu1 %v1299_v2, %s1201_s18  ;;  %209 = vrot.lane.b32.xlu0 %v1299_v2, %s1200_s17 }
  0x62   :  { %308 = vrot.lane.b32.xlu1 %v1299_v2, %s1204_s0  ;;  %275 = vrot.lane.b32.xlu0 %v1299_v2, %s1202_s19 }
  0x98   :  { %v105_v11 = vpop.permute.xlu1 %104  ;;  %v70_v12 = vpop.permute.xlu0 %69 }
  0x9c   :  { %v1388_v16 = vpop.permute.xlu1 %106  ;;  %v1390_v17 = vpop.permute.xlu0 %71 }
  0x9d   :  { %v115_v18 = vsel %vm112_vm0, %v105_v11, %v1388_v16  ;;  %v82_v19 = vsel %vm79_vm1, %v70_v12, %v1390_v17 }
  0x9e   :  { %v101_v22 = vmul.f32 %v1380_v13, %v82_v19  ;;  %v134_v23 = vmul.f32 %v1384_v14, %v115_v18  ;;  %v1497_v18 = vsub.s32 6, %v1364_v6 }
  0xa0   :  { %v1408_v24 = vpop.permute.xlu1 %110  ;;  %v1410_v25 = vpop.permute.xlu0 %75  ;;  %v1001_v26 = vpack.c.bf16 %v134_v23, %v101_v22 }
  0xa1   :  { %v116_v27 = vsel %vm112_vm0, %v1408_v24, %v105_v11  ;;  %v83_v28 = vsel %vm79_vm1, %v1410_v25, %v70_v12  ;;  %v1494_v12 = vsub.s32 5, %v1364_v6 }
  0xa2   :  { %v133_v29 = vmul.f32 %v1400_v20, %v116_v27  ;;  %v100_v30 = vmul.f32 %v1404_v21, %v83_v28  ;;  %1002 = vmatprep.subr.bf16.mxu0 %v1001_v26  ;;  %v1510_v26 = vrot.slane %v1374_v10, %v1497_v18 }
  0xa3   :  { %v1505_v23 = vrot.slane %v1374_v10, %v1494_v12 }
  0xa4   :  { %v1426_v33 = vpop.permute.xlu1 %139  ;;  %v138_v34 = vpop.permute.xlu0 %137  ;;  %v1003_v35 = vpack.c.bf16 %v133_v29, %v100_v30 }
  0xa5   :  { %v148_v38 = vsel %vm145_vm2, %v138_v34, %v1426_v33 }
  0xa6   :  { %1004 = vmatpush1.bf16.msra.mxu0 %v1003_v35  ;;  %v167_v43 = vmul.f32 %v1431_v36, %v148_v38  ;;  %v1530_v38 = vrot.slane %v1386_v15, %v1497_v18 }
  0xa8   :  { %v1441_v39 = vpop.permute.xlu1 %172  ;;  %v171_v40 = vpop.permute.xlu0 %170 }
  0xa9   :  { %v181_v41 = vsel %vm178_vm3, %v171_v40, %v1441_v39 }
  0xaa   :  { %v200_v44 = vmul.f32 %v1436_v37, %v181_v41 }
  0xac   :  { %v1459_v47 = vpop.permute.xlu1 %176  ;;  %v1461_v48 = vpop.permute.xlu0 %143  ;;  %v1005_v49 = vpack.c.bf16 %v200_v44, %v167_v43 }
  0xad   :  { %v182_v50 = vsel %vm178_vm3, %v1459_v47, %v171_v40  ;;  %v149_v51 = vsel %vm145_vm2, %v1461_v48, %v138_v34  ;;  %v1533_v40 = vsub.s32 7, %v1364_v6 }
  0xae   :  { %v199_v52 = vmul.f32 %v1448_v42, %v182_v50  ;;  %v166_v53 = vmul.f32 %v1454_v45, %v149_v51  ;;  %1006 = vmatprep.subr.bf16.mxu0 %v1005_v49 }
  0xaf   :  { %v1548_v6 = vrot.slane %v1374_v10, %v1533_v40 }
  0xb0   :  { %v1476_v55 = vpop.permute.xlu1 %207  ;;  %v206_v56 = vpop.permute.xlu0 %205  ;;  %v1007_v57 = vpack.c.bf16 %v199_v52, %v166_v53  ;;  %v1550_v53 = vld [vmem:[#allocation2 + $0x10] sm:$0xff] }
  0xb1   :  { %v213_v58 = vsel %vm211_vm4, %v206_v56, %v1476_v55 }
  0xb2   :  { %v233_v59 = vmul.f32 %v1474_v54, %v213_v58  ;;  %1008 = vmatpush1.bf16.msra.mxu0 %v1007_v57  ;;  %v1558_v58 = vrot.slane %v1386_v15, %v1533_v40 }
  0xb4   :  { %v239_v61 = vpop.permute.xlu1 %238  ;;  %v1486_v62 = vpop.permute.xlu0 %203  ;;  %v1009_v63 = vpack.c.bf16 %v233_v59, %v1290_v1 }
  0xb5   :  { %v214_v5 = vsel %vm211_vm4, %v1486_v62, %v206_v56  ;;  %v1552_v56 = vld [vmem:[#allocation2 + $0x18] sm:$0xff] }
  0xb6   :  { %v232_v11 = vmul.f32 %v1484_v60, %v214_v5  ;;  %1010 = vmatprep.subr.bf16.mxu0 %v1009_v63  ;;  %v1570_v5 = vrot.slane %v1550_v53, %v1369_v8 }
  0xb8   :  { %v272_v19 = vpop.permute.xlu1 %271  ;;  %v1500_v22 = vpop.permute.xlu0 %240  ;;  %v1011_v1 = vpack.c.bf16 %v232_v11, %v1281_v0  ;;  %v1521_v0 = vrot.slane %v1386_v15, %v1494_v12  ;;  %v1575_v15 = vrot.slane %v1550_v53, %v1372_v9 }
  0xb9   :  { %v246_v27 = vsel %vm244_vm5, %v239_v61, %v1500_v22 }
  0xba   :  { %1012 = vmatpush1.bf16.msra.mxu0 %v1011_v1  ;;  %v266_v34 = vmul.f32 %v1505_v23, %v246_v27  ;;  %v1583_v1 = vrot.slane %v1552_v56, %v1369_v8  ;;  %v1587_v27 = vrot.slane %v1550_v53, %v1424_v32  ;;  %v1601_v8 = vrot.slane %v1550_v53, %v1421_v31 }
  0xbc   :  { %v1515_v28 = vpop.permute.xlu1 %236  ;;  %v1517_v29 = vpop.permute.xlu0 %273 }
  0xbd   :  { %v279_v30 = vsel %vm277_vm6, %v272_v19, %v1517_v29  ;;  %v247_v41 = vsel %vm244_vm5, %v1515_v28, %v239_v61 }
  0xbe   :  { %v299_v35 = vmul.f32 %v1510_v26, %v279_v30  ;;  %v265_v51 = vmul.f32 %v1521_v0, %v247_v41  ;;  %v1593_v41 = vld [vmem:[%s1988_s2] sm:$0xff] }
  0xc0   :  { %v305_v43 = vpop.permute.xlu1 %304  ;;  %v1538_v44 = vpop.permute.xlu0 %269  ;;  %v1013_v49 = vpack.c.bf16 %v299_v35, %v266_v34 }
  0xc1   :  { %v280_v50 = vsel %vm277_vm6, %v1538_v44, %v272_v19  ;;  %v1579_v19 = vrot.slane %v1552_v56, %v1372_v9  ;;  %v1597_v9 = vrot.slane %v1552_v56, %v1424_v32 }
  0xc2   :  { %v298_v52 = vmul.f32 %v1530_v38, %v280_v50  ;;  %1014 = vmatprep.subr.bf16.mxu0 %v1013_v49 }
  0xc4   :  { %v1554_v57 = vpop.permute.xlu1 %302  ;;  %v1560_v59 = vpop.permute.xlu0 %306  ;;  %v1015_v61 = vpack.c.bf16 %v298_v52, %v265_v51 }
  0xc5   :  { %v313_v63 = vsel %vm310_vm7, %v1554_v57, %v305_v43  ;;  %v312_v10 = vsel %vm310_vm7, %v305_v43, %v1560_v59  ;;  %v1605_v43 = vrot.slane %v1552_v56, %v1421_v31 }
  0xc6   :  { %v332_v11 = vmul.f32 %v1548_v6, %v312_v10  ;;  %1016 = vmatpush1.bf16.msra.mxu0 %v1015_v61  ;;  %v331_v30 = vmul.f32 %v1558_v58, %v313_v63 }
  0xc8   :  { %v109_v34 = vpop.permute.xlu1 %108  ;;  %v74_v35 = vpop.permute.xlu0 %73  ;;  %355 = vmatprep.subr.mxu0 %v332_v11  ;;  %v1627_v11 = vrot.slane %v1550_v53, %v1457_v46 }
  0xc9   :  { %v113_v49 = vsel %vm112_vm0, %v109_v34, %v1408_v24  ;;  %v114_v50 = vsel %vm112_vm0, %v1388_v16, %v109_v34  ;;  %v80_v32 = vsel %vm79_vm1, %v74_v35, %v1410_v25  ;;  %v81_v51 = vsel %vm79_vm1, %v1390_v17, %v74_v35 }
  0xca   :  { %v135_v52 = vmul.f32 %v1570_v5, %v114_v50  ;;  %v102_v31 = vmul.f32 %v1575_v15, %v81_v51  ;;  %356 = vmatpush1.msra.mxu0 %v331_v30  ;;  %v103_v61 = vmul.f32 %v1579_v19, %v80_v32  ;;  %v136_v24 = vmul.f32 %v1583_v1, %v113_v49 }
  0xcb   :  { %997 = vmatmul.mubr.msk.f32.vlgmr.msra.gmra.mrb[0].mxu0 %vm335_vm8, %v1593_v41  ;;  %v1631_v17 = vrot.slane %v1552_v56, %v1457_v46 }
  0xcc   :  { %v175_v16 = vpop.permute.xlu1 %174  ;;  %v142_v63 = vpop.permute.xlu0 %141  ;;  %v1017_v10 = vpack.c.bf16 %v136_v24, %v103_v61  ;;  %v1019_v25 = vpack.c.bf16 %v135_v52, %v102_v31  ;;  %803 = vmatprep.mubr.f32.mxu0 %v1203_v4 }
  0xcd   :  { %v179_v30 = vsel %vm178_vm3, %v175_v16, %v1459_v47  ;;  %v180_v34 = vsel %vm178_vm3, %v1441_v39, %v175_v16  ;;  %v146_v35 = vsel %vm145_vm2, %v142_v63, %v1461_v48  ;;  %v147_v49 = vsel %vm145_vm2, %v1426_v33, %v142_v63 }
  0xce   :  { %v201_v46 = vmul.f32 %v1587_v27, %v180_v34  ;;  %v202_v50 = vmul.f32 %v1597_v9, %v179_v30  ;;  %v168_v32 = vmul.f32 %v1601_v8, %v147_v49  ;;  %v169_v47 = vmul.f32 %v1605_v43, %v146_v35  ;;  %1018 = vmatprep.subr.bf16.mxu1 %v1017_v10 }
  0xcf   :  { %1020 = vmatpush1.bf16.msra.mxu1 %v1019_v25  ;;  %v1652_v48 = vrot.slane %v1550_v53, %v1494_v12  ;;  %v1656_v33 = vrot.slane %v1552_v56, %v1494_v12  ;;  %v1668_v10 = vrot.slane %v1550_v53, %v1497_v18  ;;  %v1672_v12 = vrot.slane %v1552_v56, %v1497_v18 }
  0xd0   :  { %v243_v51 = vpop.permute.xlu1 %242  ;;  %v210_v39 = vpop.permute.xlu0 %209  ;;  %v1021_v52 = vpack.c.bf16 %v202_v50, %v169_v47  ;;  %v1023_v31 = vpack.c.bf16 %v201_v46, %v168_v32  ;;  %v1684_v49 = vrot.slane %v1552_v56, %v1533_v40  ;;  %v1701_v32 = vrot.slane %v1550_v53, %v1533_v40 }
  0xd1   :  { %v212_v61 = vsel %vm211_vm4, %v1476_v55, %v210_v39  ;;  %v215_v24 = vsel %vm211_vm4, %v210_v39, %v1486_v62  ;;  %v245_v55 = vsel %vm244_vm5, %v1500_v22, %v243_v51  ;;  %v248_v62 = vsel %vm244_vm5, %v243_v51, %v1515_v28 }
  0xd2   :  { %v234_v16 = vmul.f32 %v1627_v11, %v212_v61  ;;  %v235_v63 = vmul.f32 %v1631_v17, %v215_v24  ;;  %1022 = vmatprep.subr.bf16.mxu1 %v1021_v52  ;;  %v267_v28 = vmul.f32 %v1652_v48, %v245_v55  ;;  %v268_v46 = vmul.f32 %v1656_v33, %v248_v62 }
  0xd3   :  { %1024 = vmatpush1.bf16.msra.mxu1 %v1023_v31 }
  0xd4   :  { %v309_v25 = vpop.permute.xlu1 %308  ;;  %v276_v30 = vpop.permute.xlu0 %275  ;;  %v1025_v34 = vpack.c.bf16 %v235_v63, %v1299_v2  ;;  %v1027_v35 = vpack.c.bf16 %v234_v16, %v1320_v3 }
  0xd5   :  { %v278_v18 = vsel %vm277_vm6, %v1517_v29, %v276_v30  ;;  %v281_v22 = vsel %vm277_vm6, %v276_v30, %v1538_v44  ;;  %v314_v56 = vsel %vm310_vm7, %v309_v25, %v1554_v57  ;;  %v311_v44 = vsel %vm310_vm7, %v1560_v59, %v309_v25 }
  0xd6   :  { %v300_v2 = vmul.f32 %v1668_v10, %v278_v18  ;;  %v301_v3 = vmul.f32 %v1672_v12, %v281_v22  ;;  %1026 = vmatprep.subr.bf16.mxu1 %v1025_v34  ;;  %v334_v47 = vmul.f32 %v1684_v49, %v314_v56  ;;  %v333_v51 = vmul.f32 %v1701_v32, %v311_v44 }
  0xd7   :  { %1028 = vmatpush1.bf16.msra.mxu1 %v1027_v35 }
  0xd8   :  { %v1029_v50 = vpack.c.bf16 %v301_v3, %v268_v46  ;;  %v1031_v29 = vpack.c.bf16 %v300_v2, %v267_v28  ;;  %v1205_v2 = vmov 0  }
  0xd9   :  { %1104 = vset.pattern.permute.xlu1 %v1205_v2  ;;  %1105 = vset.pattern.permute.xlu0 %v1205_v2 }
  0xda   :  { %1030 = vmatprep.subr.bf16.mxu1 %v1029_v50 }
  0xdb   :  { %1032 = vmatpush1.bf16.msra.mxu1 %v1031_v29 }
  0xdc   :  { %426 = vmatprep.subr.mxu1 %v334_v47 }
  0xdf   :  { %427 = vmatpush1.msra.mxu1 %v333_v51 }
  0xe0   :  { %998 = vmatmul.mubr.msk.f32.vlgmr.msra.gmra.mrb[0].mxu1 %vm335_vm8, %v1593_v41 }
  0xe1   :  { %874 = vmatprep.mubr.f32.mxu1 %v1203_v4 }
 0x19e   :  { %v405_v57 = vpop.f32.mrb[0].mxu0 }
 0x19f   :  { %v407_v40 = vpop.f32.mrb[1].mxu0 }
 0x1a0   :  { %v481_v53 = vadd.f32 %v407_v40, %v405_v57 }
 0x1a2   :  { %482 = vadd.xlane.f32.xlu0 %v481_v53 }
 0x1b3   :  { %v476_v39 = vpop.f32.mrb[0].mxu1 }
 0x1b4   :  { %v478_v52 = vpop.f32.mrb[1].mxu1 }
 0x1b5   :  { %v547_v59 = vadd.f32 %v478_v52, %v476_v39 }
 0x1b7   :  { %548 = vadd.xlane.f32.xlu0 %v547_v59 }
 0x22f   :  { %v483_v31 = vpop.xlane.xlu0 %482 }
 0x230   :  { %v484_v61 = vrot.slane %v483_v31, 4 }
 0x232   :  { %v485_v24 = vadd.f32 %v484_v61, %v483_v31  ;;  %v1715_v61 = vld [vmem:[%s1990_s4] sm:$0xff] }
 0x234   :  { %v486_v16 = vrot.slane %v485_v24, 2 }
 0x236   :  { %v487_v63 = vadd.f32 %v486_v16, %v485_v24 }
 0x238   :  { %v488_v55 = vrot.slane %v487_v63, 1 }
 0x23a   :  { %v489_v62 = vadd.f32 %v488_v55, %v487_v63 }
 0x23c   :  { %1065 = vpush %v489_v62 }
 0x244   :  { %v549_v29 = vpop.xlane.xlu0 %548 }
 0x245   :  { %v550_v44 = vrot.slane %v549_v29, 4 }
 0x247   :  { %v551_v47 = vadd.f32 %v550_v44, %v549_v29 }
 0x249   :  { %v552_v51 = vrot.slane %v551_v47, 2 }
 0x26d   :  { %s1066_s2 = spop %1065 }
 0x26e   :  { %s491_s22 = smul.f32 0.00048828125, %s1066_s2 }
 0x270   :  { %v492_v41 = vstv %s491_s22 }
 0x271   :  { %v493_v4 = vsub.f32 %v405_v57, %v492_v41  ;;  %v494_v25 = vsub.f32 %v407_v40, %v492_v41  ;;  %v553_v40 = vadd.f32 %v552_v51, %v551_v47  ;;  %v61_v41 = vld [vmem:[%s1991_s5] sm:$0xff] }
 0x273   :  { %v495_v30 = vmul.f32 %v493_v4, %v493_v4  ;;  %v496_v34 = vmul.f32 %v494_v25, %v494_v25  ;;  %v554_v53 = vrot.slane %v553_v40, 1 }
 0x275   :  { %v497_v35 = vadd.f32 %v496_v34, %v495_v30  ;;  %v555_v31 = vadd.f32 %v554_v53, %v553_v40 }
 0x277   :  { %498 = vadd.xlane.f32.xlu1 %v497_v35 }
 0x304   :  { %v499_v18 = vpop.xlane.xlu1 %498 }
 0x305   :  { %v500_v22 = vrot.slane %v499_v18, 4 }
 0x307   :  { %v501_v28 = vadd.f32 %v500_v22, %v499_v18 }
 0x309   :  { %v502_v46 = vrot.slane %v501_v28, 2 }
 0x30b   :  { %v503_v3 = vadd.f32 %v502_v46, %v501_v28 }
 0x30d   :  { %v504_v56 = vrot.slane %v503_v3, 1 }
 0x30f   :  { %v505_v50 = vadd.f32 %v504_v56, %v503_v3 }
 0x311   :  { %1067 = vpush %v505_v50 }
 0x342   :  { %s1068_s23 = spop %1067 }
 0x343   :  { %s507_s24 = smul.f32 0.00048828125, %s1068_s23 }
 0x345   :  { %s508_s26 = smax.f32 %s1206_s25, %s507_s24 }
 0x346   :  { %s509_s1 = sadd.f32 1e-05, %s508_s26 }
 0x348   :  { %v510_v57 = vstv %s509_s1 }
 0x349   :  { %1106 = vrsqrt.f32 %v510_v57 }
 0x353   :  { %v1107_v59 = vpop.eup %1106 }
 0x354   :  { %1069 = vpush %v1107_v59 }
 0x355   :  { %1071 = vpush %v555_v31 }
 0x385   :  { %s1070_s29 = spop %1069 }
 0x386   :  { %v513_v24 = vstv %s1070_s29  ;;  %s1072_s11 = spop %1071  ;;  %s1207_s29 = smov [#allocation7]  }
 0x387   :  { %v514_v16 = vmul.f32 %v513_v24, %v1715_v61  ;;  %s557_s12 = smul.f32 0.00048828125, %s1072_s11  ;;  %s982_s11 = sshll.u32 %s1207_s29, 4  ;;  %s983_s11 = int_to_ptr.vmem [resolvable:$true] %s982_s11 }
 0x388   :  { %p1171_p3 = scmp.lt.s32.totalorder %s983_s11, %s983_s11 }
 0x389   :  { %v558_v63 = vstv %s557_s12  ;;  %517 = vperm.xlu1 %1104, %v514_v16  }
 0x38a   :  { %v1718_v55 = vsub.f32 %v476_v39, %v558_v63  ;;  %v1720_v62 = vsub.f32 %v478_v52, %v558_v63 }
 0x38c   :  { %v561_v30 = vmul.f32 %v1718_v55, %v1718_v55  ;;  %v562_v34 = vmul.f32 %v1720_v62, %v1720_v62 }
 0x38d   :  { %524 = vperm.xlu1 %1104, %v61_v41  }
 0x38e   :  { %v563_v35 = vadd.f32 %v562_v34, %v561_v30 }
 0x390   :  { %564 = vadd.xlane.f32.xlu0 %v563_v35 }
 0x408   :  { %v518_v18 = vpop.permute.xlu1 %517 }
 0x409   :  { %v520_v22 = vmul.f32 %v518_v18, %v493_v4  ;;  %v521_v28 = vmul.f32 %v518_v18, %v494_v25 }
 0x40c   :  { %v1729_v39 = vpop.permute.xlu1 %524 }
 0x40d   :  { %v527_v52 = vadd.f32 %v1729_v39, %v520_v22  ;;  %v528_v46 = vadd.f32 %v1729_v39, %v521_v28 }
 0x40f   :  { %v531_v2 = vmul.f32 %v527_v52, %v527_v52  ;;  %v532_v3 = vmul.f32 %v528_v46, %v528_v46  ;;  %v529_v16 = vmul.f32 0.5, %v527_v52  ;;  %v530_v18 = vmul.f32 0.5, %v528_v46 }
 0x411   :  { %v533_v56 = vmul.f32 %v531_v2, %v527_v52  ;;  %v534_v50 = vmul.f32 %v532_v3, %v528_v46 }
 0x413   :  { %v535_v29 = vmul.f32 0.044715, %v533_v56  ;;  %v536_v44 = vmul.f32 0.044715, %v534_v50 }
 0x415   :  { %v537_v47 = vadd.f32 %v535_v29, %v527_v52  ;;  %v538_v51 = vadd.f32 %v536_v44, %v528_v46 }
 0x417   :  { %v539_v57 = vmul.f32 0.7978846, %v537_v47  ;;  %v540_v40 = vmul.f32 0.7978846, %v538_v51 }
 0x419   :  { %1108 = vtanh.f32 %v539_v57 }
 0x41a   :  { %1110 = vtanh.f32 %v540_v40 }
 0x41d   :  { %v565_v4 = vpop.xlane.xlu0 %564 }
 0x41e   :  { %v566_v25 = vrot.slane %v565_v4, 4 }
 0x420   :  { %v567_v53 = vadd.f32 %v566_v25, %v565_v4 }
 0x422   :  { %v568_v59 = vrot.slane %v567_v53, 2 }
 0x423   :  { %v1109_v31 = vpop.eup %1108 }
 0x424   :  { %v1111_v24 = vpop.eup %1110  ;;  %v543_v63 = vadd.f32 1.0, %v1109_v31  ;;  %v569_v41 = vadd.f32 %v568_v59, %v567_v53 }
 0x425   :  { %v544_v30 = vadd.f32 1.0, %v1111_v24 }
 0x426   :  { %v1733_v34 = vmul.f32 %v543_v63, %v529_v16  ;;  %v570_v35 = vrot.slane %v569_v41, 1 }
 0x427   :  { %v1737_v28 = vmul.f32 %v544_v30, %v530_v18 }
 0x428   :  { %608 = vrot.lane.b32.xlu1 %v1733_v34, %s1197_s10  ;;  %v571_v22 = vadd.f32 %v570_v35, %v569_v41 }
 0x42a   :  { %1073 = vpush %v571_v22 }
 0x42c   :  { %610 = vrot.lane.b32.xlu1 %v1737_v28, %s1197_s10 }
 0x430   :  { %624 = vrot.lane.b32.xlu1 %v1733_v34, %s1196_s9 }
 0x434   :  { %626 = vrot.lane.b32.xlu1 %v1737_v28, %s1196_s9 }
 0x438   :  { %640 = vrot.lane.b32.xlu1 %v1733_v34, %s1198_s13 }
 0x43c   :  { %656 = vrot.lane.b32.xlu1 %v1733_v34, %s1199_s14 }
 0x440   :  { %674 = vrot.lane.b32.xlu1 %v1737_v28, %s1200_s17 }
 0x444   :  { %672 = vrot.lane.b32.xlu1 %v1733_v34, %s1200_s17 }
 0x45b   :  { %s1074_s4 = spop %1073 }
 0x45c   :  { %s573_s5 = smul.f32 0.00048828125, %s1074_s4 }
 0x45e   :  { %s574_s15 = smax.f32 %s1206_s25, %s573_s5 }
 0x45f   :  { %s575_s16 = sadd.f32 1e-05, %s574_s15 }
 0x461   :  { %v576_v52 = vstv %s575_s16 }
 0x462   :  { %1112 = vrsqrt.f32 %v576_v52 }
 0x46c   :  { %v1113_v46 = vpop.eup %1112 }
 0x46d   :  { %1075 = vpush %v1113_v46 }
 0x49a   :  { %v1754_v2 = vpop.permute.xlu1 %608 }
 0x49e   :  { %s1076_s20 = spop %1075  ;;  %v1756_v3 = vpop.permute.xlu1 %610 }
 0x49f   :  { %v579_v56 = vstv %s1076_s20  ;;  %v618_v44 = vsel %vm79_vm1, %v1754_v2, %v1756_v3 }
 0x4a0   :  { %v580_v50 = vmul.f32 %v579_v56, %v1715_v61  ;;  %v621_v61 = vmul.f32 %v618_v44, %v1380_v13 }
 0x4a2   :  { %583 = vperm.xlu0 %1105, %v580_v50   ;;  %v1759_v29 = vpop.permute.xlu1 %624 }
 0x4a6   :  { %642 = vrot.lane.b32.xlu0 %v1737_v28, %s1198_s13  ;;  %v1767_v47 = vpop.permute.xlu1 %626 }
 0x4a7   :  { %v634_v51 = vsel %vm112_vm0, %v1759_v29, %v1767_v47 }
 0x4a8   :  { %v637_v57 = vmul.f32 %v634_v51, %v1384_v14 }
 0x4aa   :  { %658 = vrot.lane.b32.xlu0 %v1737_v28, %s1199_s14  ;;  %v1033_v40 = vpack.c.bf16 %v637_v57, %v621_v61  ;;  %v641_v51 = vpop.permute.xlu1 %640 }
 0x4ac   :  { %1034 = vmatprep.subr.bf16.mxu0 %v1033_v40 }
 0x4ae   :  { %690 = vrot.lane.b32.xlu0 %v1737_v28, %s1201_s18  ;;  %v657_v57 = vpop.permute.xlu1 %656 }
 0x4b2   :  { %706 = vrot.lane.b32.xlu0 %v1737_v28, %s1202_s19 }
 0x521   :  { %v584_v4 = vpop.permute.xlu0 %583 }
 0x522   :  { %v586_v25 = vmul.f32 %v584_v4, %v1718_v55  ;;  %v587_v53 = vmul.f32 %v584_v4, %v1720_v62  ;;  %v675_v4 = vpop.permute.xlu1 %674 }
 0x524   :  { %v588_v13 = vadd.f32 %v586_v25, %v1729_v39  ;;  %v589_v14 = vadd.f32 %v587_v53, %v1729_v39 }
 0x525   :  { %v1829_v61 = vpop.permute.xlu0 %642 }
 0x526   :  { %v592_v59 = vmul.f32 %v588_v13, %v588_v13  ;;  %v593_v31 = vmul.f32 %v589_v14, %v589_v14  ;;  %v591_v46 = vmul.f32 0.5, %v589_v14  ;;  %v590_v39 = vmul.f32 0.5, %v588_v13  ;;  %v1833_v53 = vpop.permute.xlu1 %672 }
 0x528   :  { %v594_v24 = vmul.f32 %v592_v59, %v588_v13  ;;  %v595_v16 = vmul.f32 %v593_v31, %v589_v14 }
 0x529   :  { %v1831_v40 = vpop.permute.xlu0 %658 }
 0x52a   :  { %v596_v63 = vmul.f32 0.044715, %v594_v24  ;;  %v597_v41 = vmul.f32 0.044715, %v595_v16  ;;  %v666_v31 = vsel %vm178_vm3, %v657_v57, %v1831_v40  ;;  %v650_v16 = vsel %vm145_vm2, %v641_v51, %v1829_v61 }
 0x52c   :  { %v598_v30 = vadd.f32 %v596_v63, %v588_v13  ;;  %v599_v35 = vadd.f32 %v597_v41, %v589_v14 }
 0x52d   :  { %v691_v25 = vpop.permute.xlu0 %690 }
 0x52e   :  { %v600_v18 = vmul.f32 0.7978846, %v598_v30  ;;  %v601_v22 = vmul.f32 0.7978846, %v599_v35  ;;  %v669_v30 = vmul.f32 %v666_v31, %v1436_v37 }
 0x530   :  { %1114 = vtanh.f32 %v600_v18 }
 0x531   :  { %1116 = vtanh.f32 %v601_v22  ;;  %v707_v13 = vpop.permute.xlu0 %706 }
 0x53a   :  { %v1115_v52 = vpop.eup %1114 }
 0x53b   :  { %v1117_v55 = vpop.eup %1116  ;;  %v604_v56 = vadd.f32 1.0, %v1115_v52  ;;  %v653_v52 = vmul.f32 %v650_v16, %v1431_v36 }
 0x53c   :  { %v605_v62 = vadd.f32 1.0, %v1117_v55 }
 0x53d   :  { %v1791_v44 = vmul.f32 %v604_v56, %v590_v39  ;;  %v1037_v56 = vpack.c.bf16 %v669_v30, %v653_v52 }
 0x53e   :  { %v1785_v50 = vmul.f32 %v605_v62, %v591_v46 }
 0x540   :  { %662 = vrot.lane.b32.xlu0 %v1785_v50, %s1199_s14  ;;  %614 = vrot.lane.b32.xlu1 %v1785_v50, %s1197_s10 }
 0x544   :  { %630 = vrot.lane.b32.xlu1 %v1785_v50, %s1196_s9  ;;  %676 = vrot.lane.b32.xlu0 %v1791_v44, %s1200_s17 }
 0x548   :  { %646 = vrot.lane.b32.xlu1 %v1785_v50, %s1198_s13  ;;  %688 = vrot.lane.b32.xlu0 %v1733_v34, %s1201_s18 }
 0x54c   :  { %692 = vrot.lane.b32.xlu1 %v1791_v44, %s1201_s18  ;;  %722 = vrot.lane.b32.xlu0 %v1737_v28, %s1204_s0 }
 0x550   :  { %708 = vrot.lane.b32.xlu1 %v1791_v44, %s1202_s19  ;;  %720 = vrot.lane.b32.xlu0 %v1733_v34, %s1204_s0 }
 0x554   :  { %704 = vrot.lane.b32.xlu1 %v1733_v34, %s1202_s19  ;;  %628 = vrot.lane.b32.xlu0 %v1791_v44, %s1196_s9 }
 0x558   :  { %724 = vrot.lane.b32.xlu1 %v1791_v44, %s1204_s0  ;;  %660 = vrot.lane.b32.xlu0 %v1791_v44, %s1199_s14 }
 0x55c   :  { %612 = vrot.lane.b32.xlu1 %v1791_v44, %s1197_s10  ;;  %694 = vrot.lane.b32.xlu0 %v1785_v50, %s1201_s18 }
 0x560   :  { %644 = vrot.lane.b32.xlu1 %v1791_v44, %s1198_s13  ;;  %726 = vrot.lane.b32.xlu0 %v1785_v50, %s1204_s0 }
 0x564   :  { %678 = vrot.lane.b32.xlu1 %v1785_v50, %s1200_s17 }
 0x568   :  { %710 = vrot.lane.b32.xlu1 %v1785_v50, %s1202_s19 }
 0x5b2   :  { %v615_v14 = vpop.permute.xlu1 %614  ;;  %v1835_v59 = vpop.permute.xlu0 %662 }
 0x5b3   :  { %v619_v24 = vsel %vm79_vm1, %v615_v14, %v1754_v2  ;;  %v667_v55 = vsel %vm178_vm3, %v1835_v59, %v657_v57 }
 0x5b4   :  { %v620_v18 = vmul.f32 %v619_v24, %v1404_v21  ;;  %v682_v21 = vsel %vm211_vm4, %v1833_v53, %v675_v4  ;;  %v668_v36 = vmul.f32 %v667_v55, %v1448_v42 }
 0x5b5   :  { %v684_v57 = vmul.f32 %v682_v21, %v1484_v60 }
 0x5b6   :  { %v631_v63 = vpop.permute.xlu1 %630  ;;  %v1846_v41 = vpop.permute.xlu0 %676 }
 0x5b7   :  { %v635_v35 = vsel %vm112_vm0, %v631_v63, %v1759_v29  ;;  %v681_v2 = vsel %vm211_vm4, %v675_v4, %v1846_v41  ;;  %v1043_v42 = vpack.c.bf16 %v684_v57, %v1733_v34 }
 0x5b8   :  { %v636_v22 = vmul.f32 %v635_v35, %v1400_v20  ;;  %v685_v20 = vmul.f32 %v681_v2, %v1474_v54 }
 0x5ba   :  { %v1035_v46 = vpack.c.bf16 %v636_v22, %v620_v18  ;;  %v647_v37 = vpop.permute.xlu1 %646  ;;  %v1861_v62 = vpop.permute.xlu0 %688  ;;  %v1041_v4 = vpack.c.bf16 %v685_v20, %v1737_v28 }
 0x5bb   :  { %v651_v29 = vsel %vm145_vm2, %v647_v37, %v641_v51  ;;  %v698_v35 = vsel %vm244_vm5, %v1861_v62, %v691_v25 }
 0x5bc   :  { %v652_v39 = vmul.f32 %v651_v29, %v1454_v45  ;;  %1036 = vmatpush1.bf16.msra.mxu0 %v1035_v46  ;;  %v700_v2 = vmul.f32 %v698_v35, %v1521_v0 }
 0x5bd   :  { %1038 = vmatprep.subr.bf16.mxu0 %v1037_v56  ;;  %v59_v56 = vld [vmem:[#allocation5] sm:$0xff] }
 0x5be   :  { %v1039_v31 = vpack.c.bf16 %v668_v36, %v652_v39  ;;  %v1872_v24 = vpop.permute.xlu1 %692  ;;  %v723_v16 = vpop.permute.xlu0 %722 }
 0x5bf   :  { %v697_v54 = vsel %vm244_vm5, %v691_v25, %v1872_v24 }
 0x5c0   :  { %1040 = vmatpush1.bf16.msra.mxu0 %v1039_v31  ;;  %v701_v30 = vmul.f32 %v697_v54, %v1505_v23 }
 0x5c1   :  { %1042 = vmatprep.subr.bf16.mxu0 %v1041_v4 }
 0x5c2   :  { %v1879_v51 = vpop.permute.xlu1 %708  ;;  %v1881_v45 = vpop.permute.xlu0 %720 }
 0x5c3   :  { %v713_v60 = vsel %vm277_vm6, %v707_v13, %v1879_v51 }
 0x5c4   :  { %v717_v28 = vmul.f32 %v713_v60, %v1510_v26  ;;  %1044 = vmatpush1.bf16.msra.mxu0 %v1043_v42  ;;  %v730_v26 = vsel %vm310_vm7, %v1881_v45, %v723_v16 }
 0x5c6   :  { %v705_v18 = vpop.permute.xlu1 %704  ;;  %v1045_v22 = vpack.c.bf16 %v717_v28, %v701_v30  ;;  %v629_v55 = vpop.permute.xlu0 %628 }
 0x5c7   :  { %v714_v34 = vsel %vm277_vm6, %v705_v18, %v707_v13  ;;  %v632_v13 = vsel %vm112_vm0, %v629_v55, %v631_v63  ;;  %v633_v0 = vsel %vm112_vm0, %v1767_v47, %v629_v55 }
 0x5c8   :  { %v716_v52 = vmul.f32 %v714_v34, %v1530_v38  ;;  %1046 = vmatprep.subr.bf16.mxu0 %v1045_v22  ;;  %v732_v38 = vmul.f32 %v730_v26, %v1558_v58  ;;  %v638_v39 = vmul.f32 %v633_v0, %v1570_v5  ;;  %v639_v63 = vmul.f32 %v632_v13, %v1583_v1 }
 0x5ca   :  { %v1047_v46 = vpack.c.bf16 %v716_v52, %v700_v2  ;;  %v725_v23 = vpop.permute.xlu1 %724  ;;  %v661_v20 = vpop.permute.xlu0 %660 }
 0x5cb   :  { %v729_v25 = vsel %vm310_vm7, %v723_v16, %v725_v23  ;;  %v664_v58 = vsel %vm178_vm3, %v661_v20, %v1835_v59 }
 0x5cc   :  { %v733_v21 = vmul.f32 %v729_v25, %v1548_v6  ;;  %1048 = vmatpush1.bf16.msra.mxu0 %v1047_v46  ;;  %v671_v59 = vmul.f32 %v664_v58, %v1597_v9 }
 0x5ce   :  { %v613_v29 = vpop.permute.xlu1 %612  ;;  %755 = vmatprep.subr.mxu0 %v733_v21  ;;  %v695_v16 = vpop.permute.xlu0 %694 }
 0x5cf   :  { %v616_v36 = vsel %vm79_vm1, %v613_v29, %v615_v14  ;;  %v617_v6 = vsel %vm79_vm1, %v1756_v3, %v613_v29  ;;  %v665_v14 = vsel %vm178_vm3, %v1831_v40, %v661_v20 }
 0x5d0   :  { %v622_v57 = vmul.f32 %v617_v6, %v1575_v15  ;;  %v623_v47 = vmul.f32 %v616_v36, %v1579_v19  ;;  %756 = vmatpush1.msra.mxu0 %v732_v38  ;;  %v670_v19 = vmul.f32 %v665_v14, %v1587_v27 }
 0x5d1   :  { %999 = vmatmul.mubr.msk.f32.vlgmr.msra.gmra.mrb[2].mxu0 %vm335_vm8, %v59_v56 }
 0x5d2   :  { %v1051_v3 = vpack.c.bf16 %v638_v39, %v622_v57  ;;  %v645_v31 = vpop.permute.xlu1 %644  ;;  %v1049_v5 = vpack.c.bf16 %v639_v63, %v623_v47  ;;  %v727_v30 = vpop.permute.xlu0 %726 }
 0x5d3   :  { %v648_v1 = vsel %vm145_vm2, %v645_v31, %v647_v37  ;;  %v649_v15 = vsel %vm145_vm2, %v1829_v61, %v645_v31 }
 0x5d4   :  { %v654_v4 = vmul.f32 %v649_v15, %v1601_v8  ;;  %v655_v40 = vmul.f32 %v648_v1, %v1605_v43  ;;  %1050 = vmatprep.subr.bf16.mxu1 %v1049_v5  ;;  %v696_v8 = vsel %vm244_vm5, %v1872_v24, %v695_v16  ;;  %v699_v43 = vsel %vm244_vm5, %v695_v16, %v1861_v62 }
 0x5d5   :  { %1052 = vmatpush1.bf16.msra.mxu1 %v1051_v3  ;;  %v702_v24 = vmul.f32 %v696_v8, %v1652_v48  ;;  %v703_v35 = vmul.f32 %v699_v43, %v1656_v33 }
 0x5d6   :  { %v1055_v54 = vpack.c.bf16 %v670_v19, %v654_v4  ;;  %v679_v42 = vpop.permute.xlu1 %678  ;;  %v1053_v60 = vpack.c.bf16 %v671_v59, %v655_v40  ;;  %v62_v59 = vld [vmem:[%s1992_s6] sm:$0xff] }
 0x5d7   :  { %v680_v37 = vsel %vm211_vm4, %v1846_v41, %v679_v42  ;;  %v683_v27 = vsel %vm211_vm4, %v679_v42, %v1833_v53 }
 0x5d8   :  { %v686_v9 = vmul.f32 %v680_v37, %v1627_v11  ;;  %v687_v61 = vmul.f32 %v683_v27, %v1631_v17  ;;  %1054 = vmatprep.subr.bf16.mxu1 %v1053_v60 }
 0x5d9   :  { %1056 = vmatpush1.bf16.msra.mxu1 %v1055_v54 }
 0x5da   :  { %v1059_v41 = vpack.c.bf16 %v686_v9, %v1791_v44  ;;  %v711_v28 = vpop.permute.xlu1 %710  ;;  %v1057_v53 = vpack.c.bf16 %v687_v61, %v1785_v50  ;;  %v731_v50 = vsel %vm310_vm7, %v727_v30, %v1881_v45  ;;  %v63_v9 = vld [vmem:[%s1993_s7] sm:$0xff] }
 0x5db   :  { %v712_v11 = vsel %vm277_vm6, %v1879_v51, %v711_v28  ;;  %v715_v17 = vsel %vm277_vm6, %v711_v28, %v705_v18  ;;  %v728_v51 = vsel %vm310_vm7, %v725_v23, %v727_v30  ;;  %v735_v18 = vmul.f32 %v731_v50, %v1684_v49 }
 0x5dc   :  { %v718_v62 = vmul.f32 %v712_v11, %v1668_v10  ;;  %v719_v22 = vmul.f32 %v715_v17, %v1672_v12  ;;  %1058 = vmatprep.subr.bf16.mxu1 %v1057_v53  ;;  %v734_v48 = vmul.f32 %v728_v51, %v1701_v32 }
 0x5dd   :  { %1060 = vmatpush1.bf16.msra.mxu1 %v1059_v41 }
 0x5de   :  { %v1063_v44 = vpack.c.bf16 %v718_v62, %v702_v24  ;;  %v1061_v34 = vpack.c.bf16 %v719_v22, %v703_v35 }
 0x5e0   :  { %1062 = vmatprep.subr.bf16.mxu1 %v1061_v34 }
 0x5e1   :  { %1064 = vmatpush1.bf16.msra.mxu1 %v1063_v44 }
 0x5e2   :  { %826 = vmatprep.subr.mxu1 %v735_v18 }
 0x5e5   :  { %827 = vmatpush1.msra.mxu1 %v734_v48 }
 0x5e6   :  { %1000 = vmatmul.mubr.msk.f32.vlgmr.msra.gmra.mrb[2].mxu1 %vm335_vm8, %v59_v56 }
 0x6a4   :  { %v805_v33 = vpop.f32.mrb[2].mxu0 }
 0x6a5   :  { %v807_v10 = vpop.f32.mrb[3].mxu0 }
 0x6a6   :  { %v881_v12 = vadd.f32 %v807_v10, %v805_v33 }
 0x6a8   :  { %882 = vadd.xlane.f32.xlu1 %v881_v12 }
 0x6b9   :  { %v876_v45 = vpop.f32.mrb[2].mxu1 }
 0x6ba   :  { %v878_v2 = vpop.f32.mrb[3].mxu1 }
 0x6bb   :  { %v931_v52 = vadd.f32 %v878_v2, %v876_v45 }
 0x735   :  { %v883_v55 = vpop.xlane.xlu1 %882 }
 0x736   :  { %v884_v7 = vrot.slane %v883_v55, 4 }
 0x738   :  { %v885_v46 = vadd.f32 %v884_v7, %v883_v55 }
 0x73a   :  { %v886_v23 = vrot.slane %v885_v46, 2 }
 0x73c   :  { %v887_v49 = vadd.f32 %v886_v23, %v885_v46 }
 0x73e   :  { %v888_v26 = vrot.slane %v887_v49, 1 }
 0x740   :  { %v889_v25 = vadd.f32 %v888_v26, %v887_v49 }
 0x742   :  { %1077 = vpush %v889_v25 }
 0x773   :  { %s1078_s10 = spop %1077 }
 0x774   :  { %s891_s13 = smul.f32 0.00048828125, %s1078_s10 }
 0x776   :  { %v892_v32 = vstv %s891_s13 }
 0x777   :  { %v893_v21 = vsub.f32 %v805_v33, %v892_v32  ;;  %v894_v13 = vsub.f32 %v807_v10, %v892_v32 }
 0x779   :  { %v895_v0 = vmul.f32 %v893_v21, %v893_v21  ;;  %v896_v38 = vmul.f32 %v894_v13, %v894_v13 }
 0x77b   :  { %v897_v20 = vadd.f32 %v896_v38, %v895_v0 }
 0x77d   :  { %898 = vadd.xlane.f32.xlu0 %v897_v20 }
 0x781   :  { %932 = vadd.xlane.f32.xlu0 %v931_v52 }
 0x80a   :  { %v899_v29 = vpop.xlane.xlu0 %898 }
 0x80b   :  { %v900_v56 = vrot.slane %v899_v29, 4 }
 0x80d   :  { %v901_v36 = vadd.f32 %v900_v56, %v899_v29 }
 0x80e   :  { %v933_v47 = vpop.xlane.xlu0 %932 }
 0x80f   :  { %v902_v6 = vrot.slane %v901_v36, 2  ;;  %v934_v58 = vrot.slane %v933_v47, 4 }
 0x811   :  { %v903_v39 = vadd.f32 %v902_v6, %v901_v36  ;;  %v935_v14 = vadd.f32 %v934_v58, %v933_v47 }
 0x813   :  { %v904_v63 = vrot.slane %v903_v39, 1  ;;  %v936_v3 = vrot.slane %v935_v14, 2 }
 0x815   :  { %v905_v57 = vadd.f32 %v904_v63, %v903_v39  ;;  %v937_v5 = vadd.f32 %v936_v3, %v935_v14 }
 0x817   :  { %1079 = vpush %v905_v57  ;;  %v938_v1 = vrot.slane %v937_v5, 1 }
 0x819   :  { %v939_v19 = vadd.f32 %v938_v1, %v937_v5 }
 0x848   :  { %s1080_s14 = spop %1079 }
 0x849   :  { %s907_s17 = smul.f32 0.00048828125, %s1080_s14 }
 0x84b   :  { %s908_s18 = smax.f32 %s1206_s25, %s907_s17 }
 0x84c   :  { %s909_s19 = sadd.f32 1e-05, %s908_s18 }
 0x84e   :  { %v910_v31 = vstv %s909_s19 }
 0x84f   :  { %1118 = vrsqrt.f32 %v910_v31 }
 0x859   :  { %v1119_v15 = vpop.eup %1118 }
 0x85a   :  { %1081 = vpush %v1119_v15 }
 0x85b   :  { %1083 = vpush %v939_v19 }
 0x88b   :  { %s1082_s2 = spop %1081 }
 0x88c   :  { %v913_v16 = vstv %s1082_s2  ;;  %s1084_s22 = spop %1083 }
 0x88d   :  { %v914_v4 = vmul.f32 %v913_v16, %v62_v59  ;;  %s941_s23 = smul.f32 0.00048828125, %s1084_s22 }
 0x88f   :  { %v942_v40 = vstv %s941_s23  ;;  %917 = vperm.xlu0 %1105, %v914_v4  }
 0x890   :  { %v943_v54 = vsub.f32 %v876_v45, %v942_v40  ;;  %v944_v42 = vsub.f32 %v878_v2, %v942_v40 }
 0x892   :  { %v945_v60 = vmul.f32 %v943_v54, %v943_v54  ;;  %v946_v37 = vmul.f32 %v944_v42, %v944_v42 }
 0x894   :  { %v947_v27 = vadd.f32 %v946_v37, %v945_v60 }
 0x896   :  { %948 = vadd.xlane.f32.xlu1 %v947_v27 }
 0x8a7   :  { %924 = vperm.xlu1 %1104, %v63_v9  }
 0x90e   :  { %v918_v61 = vpop.permute.xlu0 %917 }
 0x90f   :  { %v920_v30 = vmul.f32 %v918_v61, %v893_v21  ;;  %v921_v41 = vmul.f32 %v918_v61, %v894_v13 }
 0x923   :  { %v949_v8 = vpop.xlane.xlu1 %948 }
 0x924   :  { %v950_v43 = vrot.slane %v949_v8, 4 }
 0x926   :  { %v951_v28 = vadd.f32 %v950_v43, %v949_v8 }
 0x927   :  { %v925_v53 = vpop.permute.xlu1 %924 }
 0x928   :  { %v952_v11 = vrot.slane %v951_v28, 2  ;;  %v927_v17 = vadd.f32 %v925_v53, %v920_v30  ;;  %v928_v24 = vadd.f32 %v925_v53, %v921_v41 }
 0x92a   :  { %929 = vst [vmem:[#allocation7] sm:$0xff] %v927_v17  ;;  %930 = vst [vmem:[#allocation7 + $0x8] sm:$0xff] %v928_v24  ;;  %v953_v35 = vadd.f32 %v952_v11, %v951_v28 }
 0x92c   :  { %v954_v62 = vrot.slane %v953_v35, 1 }
 0x92e   :  { %v955_v22 = vadd.f32 %v954_v62, %v953_v35 }
 0x930   :  { %1085 = vpush %v955_v22 }
 0x961   :  { %s1086_s6 = spop %1085 }
 0x962   :  { %s957_s1 = smul.f32 0.00048828125, %s1086_s6 }
 0x964   :  { %s958_s7 = smax.f32 %s1206_s25, %s957_s1  ;;  %s1166_s25 = scalar_lea.vmem %s983_s11, 512 }
 0x965   :  { %s959_s27 = sadd.f32 1e-05, %s958_s7  ;;  %p1167_p2 = scmp.ne.s32.totalorder %s983_s11, %s1166_s25 }
 0x966   :  { %p1172_p4 = scmp.lt.s32.totalorder %s1166_s25, %s1166_s25 }
 0x967   :  { %v960_v50 = vstv %s959_s27 }
 0x968   :  { %1120 = vrsqrt.f32 %v960_v50  ;;  %p1173_p5 = por %p1172_p4, %p1171_p3 }
 0x96a   :  { %p1174_p6 = pnand %p1173_p5, %p1167_p2 }
 0x972   :  { %v1121_v44 = vpop.eup %1120 }
 0x973   :  { %1087 = vpush %v1121_v44 }
 0x9a4   :  { %s1088_s28 = spop %1087 }
 0x9a5   :  { %v963_v34 = vstv %s1088_s28 }
 0x9a6   :  { %v964_v51 = vmul.f32 %v963_v34, %v62_v59 }
 0x9a8   :  { %967 = vperm.xlu1 %1104, %v964_v51  }
 0xa27   :  { %v968_v18 = vpop.permute.xlu1 %967 }
 0xa28   :  { %v970_v48 = vmul.f32 %v968_v18, %v943_v54  ;;  %v971_v33 = vmul.f32 %v968_v18, %v944_v42 }
 0xa2a   :  { %v972_v10 = vadd.f32 %v970_v48, %v925_v53  ;;  %v973_v12 = vadd.f32 %v971_v33, %v925_v53 }
 0xa2c   :  { %975 = vst [vmem:[#allocation7 + $0x10] sm:$0xff] %v972_v10  ;;  %976 = vst [vmem:[#allocation7 + $0x18] sm:$0xff] %v973_v12 }
 0xa2d   :  { %1177 = shalt.err (!%p1174_p6)
}
 0xa2e   :  { %s1178_s30 = scalar_lea.hbm %s1994_s8, 512 }
 0xa2f   :  { %p1179_p7 = scmp.ne.s32.totalorder %s1994_s8, %s1178_s30  ;;  %p1182_p8 = scmp.lt.u32.totalorder %s1178_s30, %s1994_s8 }
 0xa31   :  { %p1184_p9 = pnand %p1182_p8, %p1179_p7 }
 0xa33   :  { %1187 = shalt.err (!%p1184_p9)
}
 0xa34   :  { %s1208_s20 = smov 256  }
 0xa35   :  { %988 = dma.vmem_to_hbm [thread:$0]  %s983_s11, 512, %s1994_s8, [#allocation4], %s1208_s20, %s1208_s20, %s1196_s9  }
 0xa36   :  { %1192 = dma.done.wait [#allocation4], 512  }
 0xa37   :  { %1193 = vsyncadd [#allocation4], 4294966784 }
 0xa38   :  { %992 = vsyncpa [#allocation3], 1 }
 0xa39   :  { %993 = vsyncpa [#allocation6], 1 }
 0xa3a   :  { %994 = vsyncpa [#allocation4], 1 }

</bundles_post_ra>
